<compile_context>
chip_gen: v6e
topology: v6e:2x2x1
jax: 0.10.0
libtpu: 0.0.40
codegen_flags: <defaults>
</compile_context>

<pallas_src>
import jax
import jax.numpy as jnp
from jax.experimental import pallas as pl
from jax.experimental.pallas import tpu as pltpu


def gru_kernel(tok_ref, embproj_ref, whh_ref, bhn_ref, wlin_ref, blin_ref,
               out_ref, gi_scratch):
    """Single-invocation GRU, whole sequence resident in VMEM.

    tok_ref:     (T*B, 1)   int32 token ids, time-major flat (row = t*B + b)
    embproj_ref: (Vp, 3H)   f32  emb_table @ W_ih^T + (b_ih + b_hh[r,z]), padded rows
    whh_ref:     (H, 3H)    bf16 W_hh^T
    bhn_ref:     (1, H)     f32  b_hn (kept separate: gated by r)
    wlin_ref:    (H, Cp)    bf16 classifier weights, zero-padded to Cp=128 lanes
    blin_ref:    (1, Cp)    f32  classifier bias, zero-padded
    out_ref:     (B, Cp)    f32  logits (padded lanes; wrapper slices [:, :C])
    gi_scratch:  (T*B, 3H)  f32  VMEM scratch holding all precomputed gate inputs
    """
    TB = tok_ref.shape[0]
    Vp = embproj_ref.shape[0]
    H = whh_ref.shape[0]
    B = out_ref.shape[0]
    T = TB // B

    # --- prologue: gate inputs for ALL (t, b) via one one-hot MXU matmul.
    # one-hot is exact 0/1 so this is an exact row gather of emb_proj.
    onehot = (jax.lax.broadcasted_iota(jnp.int32, (TB, Vp), 1) == tok_ref[...]
              ).astype(jnp.float32)
    gi_scratch[...] = jnp.dot(onehot, embproj_ref[...],
                              preferred_element_type=jnp.float32)

    # Hoist the tiny bias broadcast (JAX does not CSE broadcast_in_dim).
    bhn = jnp.broadcast_to(bhn_ref[...], (B, H))

    # Recurrence: T is small & static -> fully unrolled; only h (4 vregs) is
    # carried across steps, gate inputs come from VMEM scratch per step and
    # W_hh streams from VMEM into the MXU.
    h = jnp.zeros((B, H), jnp.float32)
    for t in range(T):
        gi = gi_scratch[t * B:(t + 1) * B, :]                       # (B, 3H) f32
        gh = jnp.dot(h.astype(jnp.bfloat16), whh_ref[...],
                     preferred_element_type=jnp.float32)            # (B, 3H) f32
        i_r, i_z, i_n = gi[:, 0:H], gi[:, H:2 * H], gi[:, 2 * H:3 * H]
        h_r, h_z, h_n = gh[:, 0:H], gh[:, H:2 * H], gh[:, 2 * H:3 * H]
        r = jax.nn.sigmoid(i_r + h_r)
        z = jax.nn.sigmoid(i_z + h_z)
        n = jnp.tanh(i_n + r * (h_n + bhn))
        h = n + z * (h - n)                          # == (1 - z) * n + z * h

    logits = jnp.dot(h.astype(jnp.bfloat16), wlin_ref[...],
                     preferred_element_type=jnp.float32) + blin_ref[...]
    out_ref[...] = logits.astype(out_ref.dtype)      # full-lane, unmasked store


def gru_model_forward(tokens, emb_table, w_ih, w_hh, b_ih, b_hh, w_lin, b_lin):
    """tokens: (B, T) int32; returns logits (B, num_classes)."""
    B, T = tokens.shape
    V, E = emb_table.shape
    H = w_hh.shape[1]          # w_hh: (3H, H)
    C = w_lin.shape[0]         # w_lin: (C, H)
    C_pad = 128                                  # lane-dense output
    V_pad = ((V + 127) // 128) * 128             # aligned one-hot contraction

    # Fold b_ih (all gates) + b_hh (r, z gates); b_hn stays separate (gated by r).
    brz = b_ih + jnp.concatenate([b_hh[:2 * H], jnp.zeros((H,), b_hh.dtype)])

    # Precompute the entire input projection table once: (V, 3H) ~ tiny.
    emb_proj = (jnp.dot(emb_table, w_ih.T,
                        precision=jax.lax.Precision.HIGHEST)
                + brz[None, :]).astype(jnp.float32)
    emb_proj = jnp.pad(emb_proj, ((0, V_pad - V), (0, 0)))

    # Time-major flat token ids: row t*B + b  <->  tokens[b, t].
    tok_tm = tokens.T.reshape(T * B, 1).astype(jnp.int32)

    whh_bf16 = jnp.transpose(w_hh).astype(jnp.bfloat16)          # (H, 3H)
    bhn = b_hh[2 * H:3 * H].reshape(1, H).astype(jnp.float32)

    wlin_pad = jnp.zeros((H, C_pad), jnp.float32).at[:, :C].set(w_lin.T)
    wlin_bf16 = wlin_pad.astype(jnp.bfloat16)
    blin_pad = jnp.zeros((1, C_pad), jnp.float32).at[0, :C].set(b_lin)

    out = pl.pallas_call(
        gru_kernel,
        out_shape=jax.ShapeDtypeStruct((B, C_pad), jnp.float32),
        grid_spec=pltpu.PrefetchScalarGridSpec(
            num_scalar_prefetch=0,
            grid=(1,),                                   # single invocation
            in_specs=[
                pl.BlockSpec((T * B, 1), lambda i: (0, 0)),       # token ids
                pl.BlockSpec((V_pad, 3 * H), lambda i: (0, 0)),   # emb_proj
                pl.BlockSpec((H, 3 * H), lambda i: (0, 0)),       # W_hh^T bf16
                pl.BlockSpec((1, H), lambda i: (0, 0)),           # b_hn
                pl.BlockSpec((H, C_pad), lambda i: (0, 0)),       # W_lin^T bf16
                pl.BlockSpec((1, C_pad), lambda i: (0, 0)),       # b_lin
            ],
            out_specs=pl.BlockSpec((B, C_pad), lambda i: (0, 0)),
            scratch_shapes=[pltpu.VMEM((T * B, 3 * H), jnp.float32)],
        ),
        compiler_params=pltpu.CompilerParams(
            dimension_semantics=("arbitrary",)),
    )(tok_tm, emb_proj, whh_bf16, bhn, wlin_bf16, blin_pad)
    return out[:, :C]


def gru_model_reference(tokens, emb_table, w_ih, w_hh, b_ih, b_hh, w_lin, b_lin):
    """Pure-JAX reference with torch.nn.GRU(batch_first=True) semantics.

    Mirrors the kernel's numerics (bf16 MXU operands for the recurrent and
    classifier matmuls, f32 accumulation / gate math) so a tight tolerance is
    meaningful.
    """
    H = w_hh.shape[1]
    x = jnp.take(emb_table, tokens.T, axis=0)        # (T, B, E) time-major
    B = x.shape[1]
    w_hh_bf = w_hh.T.astype(jnp.bfloat16)

    def step(h, x_t):
        gi = jnp.dot(x_t, w_ih.T, precision=jax.lax.Precision.HIGHEST) + b_ih
        gh = jnp.dot(h.astype(jnp.bfloat16), w_hh_bf,
                     preferred_element_type=jnp.float32) + b_hh
        i_r, i_z, i_n = gi[:, 0:H], gi[:, H:2 * H], gi[:, 2 * H:3 * H]
        h_r, h_z, h_n = gh[:, 0:H], gh[:, H:2 * H], gh[:, 2 * H:3 * H]
        r = jax.nn.sigmoid(i_r + h_r)
        z = jax.nn.sigmoid(i_z + h_z)
        n = jnp.tanh(i_n + r * h_n)
        h_new = (1.0 - z) * n + z * h
        return h_new, None

    h0 = jnp.zeros((B, H), jnp.float32)
    h_last, _ = jax.lax.scan(step, h0, x)
    return jnp.dot(h_last.astype(jnp.bfloat16), w_lin.T.astype(jnp.bfloat16),
                   preferred_element_type=jnp.float32) + b_lin


if __name__ == "__main__":
    # Small, module-consistent shapes (emb_size / hidden_size defaults = 128).
    vocab_size = 50
    num_classes = 8
    emb_size = 128
    hidden_size = 128
    B, T = 8, 8

    key = jax.random.PRNGKey(0)
    ks = jax.random.split(key, 8)

    tokens = jax.random.randint(ks[0], (B, T), 0, vocab_size, dtype=jnp.int32)
    emb_table = jax.random.normal(ks[1], (vocab_size, emb_size), jnp.float32) * 0.1
    w_ih = jax.random.normal(ks[2], (3 * hidden_size, emb_size), jnp.float32) * 0.05
    w_hh = jax.random.normal(ks[3], (3 * hidden_size, hidden_size), jnp.float32) * 0.05
    b_ih = jax.random.normal(ks[4], (3 * hidden_size,), jnp.float32) * 0.05
    b_hh = jax.random.normal(ks[5], (3 * hidden_size,), jnp.float32) * 0.05
    w_lin = jax.random.normal(ks[6], (num_classes, hidden_size), jnp.float32) * 0.05
    b_lin = jax.random.normal(ks[7], (num_classes,), jnp.float32) * 0.05

    out = gru_model_forward(tokens, emb_table, w_ih, w_hh, b_ih, b_hh, w_lin, b_lin)
    out = jax.block_until_ready(out)

    ref = gru_model_reference(tokens, emb_table, w_ih, w_hh, b_ih, b_hh, w_lin, b_lin)
    ref = jax.block_until_ready(ref)

    assert out.shape == (B, num_classes)
    assert jnp.allclose(out, ref, atol=2e-3, rtol=2e-3), "mismatch vs reference"
    print("KERNEL_OK")
</pallas_src>

<mosaic_0001>
module attributes {stable_mosaic.version = 11 : i64} {
  func.func @gru_kernel(%arg0: i32, %arg1: memref<64x1xi32, #tpu.memory_space<vmem>>, %arg2: memref<128x384xf32, #tpu.memory_space<vmem>>, %arg3: memref<128x384xbf16, #tpu.memory_space<vmem>>, %arg4: memref<1x128xf32, #tpu.memory_space<vmem>>, %arg5: memref<128x128xbf16, #tpu.memory_space<vmem>>, %arg6: memref<1x128xf32, #tpu.memory_space<vmem>>, %arg7: memref<8x128xf32, #tpu.memory_space<vmem>>, %arg8: memref<64x384xf32, #tpu.memory_space<vmem>>) attributes {dimension_semantics = [#tpu.dimension_semantics<arbitrary>], iteration_bounds = array<i64: 1>, scalar_prefetch = 0 : i64, scratch_operands = 1 : i64, tpu.core_type = #tpu.core_type<tc>, window_params = [{pipeline_mode = #tpu.pipeline_mode<synchronous>, transform_indices = @transform_0, window_bounds = array<i64: 64, 1>}, {pipeline_mode = #tpu.pipeline_mode<synchronous>, transform_indices = @transform_1, window_bounds = array<i64: 128, 384>}, {pipeline_mode = #tpu.pipeline_mode<synchronous>, transform_indices = @transform_2, window_bounds = array<i64: 128, 384>}, {pipeline_mode = #tpu.pipeline_mode<synchronous>, transform_indices = @transform_3, window_bounds = array<i64: 1, 128>}, {pipeline_mode = #tpu.pipeline_mode<synchronous>, transform_indices = @transform_4, window_bounds = array<i64: 128, 128>}, {pipeline_mode = #tpu.pipeline_mode<synchronous>, transform_indices = @transform_5, window_bounds = array<i64: 1, 128>}, {pipeline_mode = #tpu.pipeline_mode<synchronous>, transform_indices = @transform_6, window_bounds = array<i64: 8, 128>}]} {
    %0 = tpu.iota {dimensions = array<i32: 1>} : vector<64x128xi32>
    %c0 = arith.constant 0 : index
    %c0_0 = arith.constant 0 : index
    %1 = vector.load %arg1[%c0, %c0_0] : memref<64x1xi32, #tpu.memory_space<vmem>>, vector<64x1xi32>
    %2 = vector.broadcast %1 : vector<64x1xi32> to vector<64x128xi32>
    %3 = arith.cmpi eq, %0, %2 : vector<64x128xi32>
    %4 = arith.extui %3 : vector<64x128xi1> to vector<64x128xi32>
    %5 = arith.sitofp %4 : vector<64x128xi32> to vector<64x128xf32>
    %c0_1 = arith.constant 0 : index
    %c0_2 = arith.constant 0 : index
    %6 = vector.load %arg2[%c0_1, %c0_2] : memref<128x384xf32, #tpu.memory_space<vmem>>, vector<128x384xf32>
    %cst = arith.constant dense<0.000000e+00> : vector<64x384xf32>
    %7 = tpu.matmul %5, %6, %cst {dimension_numbers = #tpu.dot_dimension_numbers<[1], [0], [0], [1], [0, 0, 1, 1], [], []>} : vector<64x128xf32>, vector<128x384xf32>, vector<64x384xf32> -> vector<64x384xf32>
    %c0_3 = arith.constant 0 : index
    %c0_4 = arith.constant 0 : index
    %8 = vector.load %arg8[%c0_3, %c0_4] : memref<64x384xf32, #tpu.memory_space<vmem>>, vector<64x384xf32>
    tpu.vector_store %arg8[%c0_3, %c0_4], %7 {strides = array<i32>} : memref<64x384xf32, #tpu.memory_space<vmem>>, vector<64x384xf32>,
    %c0_5 = arith.constant 0 : index
    %c0_6 = arith.constant 0 : index
    %9 = vector.load %arg4[%c0_5, %c0_6] : memref<1x128xf32, #tpu.memory_space<vmem>>, vector<1x128xf32>
    %10 = vector.shape_cast %9 : vector<1x128xf32> to vector<1x128xf32>
    %11 = vector.broadcast %10 : vector<1x128xf32> to vector<8x128xf32>
    %cst_7 = arith.constant 0.000000e+00 : f32
    %12 = vector.broadcast %cst_7 : f32 to vector<8x128xf32>
    %c0_8 = arith.constant 0 : index
    %c0_9 = arith.constant 0 : index
    %13 = vector.load %arg8[%c0_8, %c0_9] : memref<64x384xf32, #tpu.memory_space<vmem>>, vector<8x384xf32>
    %14 = arith.truncf %12 : vector<8x128xf32> to vector<8x128xbf16>
    %c0_10 = arith.constant 0 : index
    %c0_11 = arith.constant 0 : index
    %15 = vector.load %arg3[%c0_10, %c0_11] : memref<128x384xbf16, #tpu.memory_space<vmem>>, vector<128x384xbf16>
    %cst_12 = arith.constant dense<0.000000e+00> : vector<8x384xf32>
    %16 = tpu.matmul %14, %15, %cst_12 {dimension_numbers = #tpu.dot_dimension_numbers<[1], [0], [0], [1], [0, 0, 1, 1], [], []>} : vector<8x128xbf16>, vector<128x384xbf16>, vector<8x384xf32> -> vector<8x384xf32>
    %17 = vector.extract_strided_slice %13 {offsets = [0, 0], sizes = [8, 128], strides = [1, 1]} : vector<8x384xf32> to vector<8x128xf32>
    %18 = vector.extract_strided_slice %13 {offsets = [0, 128], sizes = [8, 128], strides = [1, 1]} : vector<8x384xf32> to vector<8x128xf32>
    %19 = vector.extract_strided_slice %13 {offsets = [0, 256], sizes = [8, 128], strides = [1, 1]} : vector<8x384xf32> to vector<8x128xf32>
    %20 = vector.extract_strided_slice %16 {offsets = [0, 0], sizes = [8, 128], strides = [1, 1]} : vector<8x384xf32> to vector<8x128xf32>
    %21 = vector.extract_strided_slice %16 {offsets = [0, 128], sizes = [8, 128], strides = [1, 1]} : vector<8x384xf32> to vector<8x128xf32>
    %22 = vector.extract_strided_slice %16 {offsets = [0, 256], sizes = [8, 128], strides = [1, 1]} : vector<8x384xf32> to vector<8x128xf32>
    %23 = arith.addf %17, %20 : vector<8x128xf32>
    %24 = arith.negf %23 : vector<8x128xf32>
    %25 = math.exp %24 : vector<8x128xf32>
    %cst_13 = arith.constant 1.000000e+00 : f32
    %26 = vector.broadcast %cst_13 : f32 to vector<8x128xf32>
    %27 = arith.addf %26, %25 : vector<8x128xf32>
    %28 = arith.divf %26, %27 : vector<8x128xf32>
    %29 = arith.addf %18, %21 : vector<8x128xf32>
    %30 = arith.negf %29 : vector<8x128xf32>
    %31 = math.exp %30 : vector<8x128xf32>
    %cst_14 = arith.constant 1.000000e+00 : f32
    %32 = vector.broadcast %cst_14 : f32 to vector<8x128xf32>
    %33 = arith.addf %32, %31 : vector<8x128xf32>
    %34 = arith.divf %32, %33 : vector<8x128xf32>
    %35 = arith.addf %22, %11 : vector<8x128xf32>
    %36 = arith.mulf %28, %35 : vector<8x128xf32>
    %37 = arith.addf %19, %36 : vector<8x128xf32>
    %38 = math.tanh %37 : vector<8x128xf32>
    %39 = arith.subf %12, %38 : vector<8x128xf32>
    %40 = arith.mulf %34, %39 : vector<8x128xf32>
    %41 = arith.addf %38, %40 : vector<8x128xf32>
    %c8 = arith.constant 8 : index
    %c0_15 = arith.constant 0 : index
    %42 = vector.load %arg8[%c8, %c0_15] : memref<64x384xf32, #tpu.memory_space<vmem>>, vector<8x384xf32>
    %43 = arith.truncf %41 : vector<8x128xf32> to vector<8x128xbf16>
    %c0_16 = arith.constant 0 : index
    %c0_17 = arith.constant 0 : index
    %44 = vector.load %arg3[%c0_16, %c0_17] : memref<128x384xbf16, #tpu.memory_space<vmem>>, vector<128x384xbf16>
    %cst_18 = arith.constant dense<0.000000e+00> : vector<8x384xf32>
    %45 = tpu.matmul %43, %44, %cst_18 {dimension_numbers = #tpu.dot_dimension_numbers<[1], [0], [0], [1], [0, 0, 1, 1], [], []>} : vector<8x128xbf16>, vector<128x384xbf16>, vector<8x384xf32> -> vector<8x384xf32>
    %46 = vector.extract_strided_slice %42 {offsets = [0, 0], sizes = [8, 128], strides = [1, 1]} : vector<8x384xf32> to vector<8x128xf32>
    %47 = vector.extract_strided_slice %42 {offsets = [0, 128], sizes = [8, 128], strides = [1, 1]} : vector<8x384xf32> to vector<8x128xf32>
    %48 = vector.extract_strided_slice %42 {offsets = [0, 256], sizes = [8, 128], strides = [1, 1]} : vector<8x384xf32> to vector<8x128xf32>
    %49 = vector.extract_strided_slice %45 {offsets = [0, 0], sizes = [8, 128], strides = [1, 1]} : vector<8x384xf32> to vector<8x128xf32>
    %50 = vector.extract_strided_slice %45 {offsets = [0, 128], sizes = [8, 128], strides = [1, 1]} : vector<8x384xf32> to vector<8x128xf32>
    %51 = vector.extract_strided_slice %45 {offsets = [0, 256], sizes = [8, 128], strides = [1, 1]} : vector<8x384xf32> to vector<8x128xf32>
    %52 = arith.addf %46, %49 : vector<8x128xf32>
    %53 = arith.negf %52 : vector<8x128xf32>
    %54 = math.exp %53 : vector<8x128xf32>
    %cst_19 = arith.constant 1.000000e+00 : f32
    %55 = vector.broadcast %cst_19 : f32 to vector<8x128xf32>
    %56 = arith.addf %55, %54 : vector<8x128xf32>
    %57 = arith.divf %55, %56 : vector<8x128xf32>
    %58 = arith.addf %47, %50 : vector<8x128xf32>
    %59 = arith.negf %58 : vector<8x128xf32>
    %60 = math.exp %59 : vector<8x128xf32>
    %cst_20 = arith.constant 1.000000e+00 : f32
    %61 = vector.broadcast %cst_20 : f32 to vector<8x128xf32>
    %62 = arith.addf %61, %60 : vector<8x128xf32>
    %63 = arith.divf %61, %62 : vector<8x128xf32>
    %64 = arith.addf %51, %11 : vector<8x128xf32>
    %65 = arith.mulf %57, %64 : vector<8x128xf32>
    %66 = arith.addf %48, %65 : vector<8x128xf32>
    %67 = math.tanh %66 : vector<8x128xf32>
    %68 = arith.subf %41, %67 : vector<8x128xf32>
    %69 = arith.mulf %63, %68 : vector<8x128xf32>
    %70 = arith.addf %67, %69 : vector<8x128xf32>
    %c16 = arith.constant 16 : index
    %c0_21 = arith.constant 0 : index
    %71 = vector.load %arg8[%c16, %c0_21] : memref<64x384xf32, #tpu.memory_space<vmem>>, vector<8x384xf32>
    %72 = arith.truncf %70 : vector<8x128xf32> to vector<8x128xbf16>
    %c0_22 = arith.constant 0 : index
    %c0_23 = arith.constant 0 : index
    %73 = vector.load %arg3[%c0_22, %c0_23] : memref<128x384xbf16, #tpu.memory_space<vmem>>, vector<128x384xbf16>
    %cst_24 = arith.constant dense<0.000000e+00> : vector<8x384xf32>
    %74 = tpu.matmul %72, %73, %cst_24 {dimension_numbers = #tpu.dot_dimension_numbers<[1], [0], [0], [1], [0, 0, 1, 1], [], []>} : vector<8x128xbf16>, vector<128x384xbf16>, vector<8x384xf32> -> vector<8x384xf32>
    %75 = vector.extract_strided_slice %71 {offsets = [0, 0], sizes = [8, 128], strides = [1, 1]} : vector<8x384xf32> to vector<8x128xf32>
    %76 = vector.extract_strided_slice %71 {offsets = [0, 128], sizes = [8, 128], strides = [1, 1]} : vector<8x384xf32> to vector<8x128xf32>
    %77 = vector.extract_strided_slice %71 {offsets = [0, 256], sizes = [8, 128], strides = [1, 1]} : vector<8x384xf32> to vector<8x128xf32>
    %78 = vector.extract_strided_slice %74 {offsets = [0, 0], sizes = [8, 128], strides = [1, 1]} : vector<8x384xf32> to vector<8x128xf32>
    %79 = vector.extract_strided_slice %74 {offsets = [0, 128], sizes = [8, 128], strides = [1, 1]} : vector<8x384xf32> to vector<8x128xf32>
    %80 = vector.extract_strided_slice %74 {offsets = [0, 256], sizes = [8, 128], strides = [1, 1]} : vector<8x384xf32> to vector<8x128xf32>
    %81 = arith.addf %75, %78 : vector<8x128xf32>
    %82 = arith.negf %81 : vector<8x128xf32>
    %83 = math.exp %82 : vector<8x128xf32>
    %cst_25 = arith.constant 1.000000e+00 : f32
    %84 = vector.broadcast %cst_25 : f32 to vector<8x128xf32>
    %85 = arith.addf %84, %83 : vector<8x128xf32>
    %86 = arith.divf %84, %85 : vector<8x128xf32>
    %87 = arith.addf %76, %79 : vector<8x128xf32>
    %88 = arith.negf %87 : vector<8x128xf32>
    %89 = math.exp %88 : vector<8x128xf32>
    %cst_26 = arith.constant 1.000000e+00 : f32
    %90 = vector.broadcast %cst_26 : f32 to vector<8x128xf32>
    %91 = arith.addf %90, %89 : vector<8x128xf32>
    %92 = arith.divf %90, %91 : vector<8x128xf32>
    %93 = arith.addf %80, %11 : vector<8x128xf32>
    %94 = arith.mulf %86, %93 : vector<8x128xf32>
    %95 = arith.addf %77, %94 : vector<8x128xf32>
    %96 = math.tanh %95 : vector<8x128xf32>
    %97 = arith.subf %70, %96 : vector<8x128xf32>
    %98 = arith.mulf %92, %97 : vector<8x128xf32>
    %99 = arith.addf %96, %98 : vector<8x128xf32>
    %c24 = arith.constant 24 : index
    %c0_27 = arith.constant 0 : index
    %100 = vector.load %arg8[%c24, %c0_27] : memref<64x384xf32, #tpu.memory_space<vmem>>, vector<8x384xf32>
    %101 = arith.truncf %99 : vector<8x128xf32> to vector<8x128xbf16>
    %c0_28 = arith.constant 0 : index
    %c0_29 = arith.constant 0 : index
    %102 = vector.load %arg3[%c0_28, %c0_29] : memref<128x384xbf16, #tpu.memory_space<vmem>>, vector<128x384xbf16>
    %cst_30 = arith.constant dense<0.000000e+00> : vector<8x384xf32>
    %103 = tpu.matmul %101, %102, %cst_30 {dimension_numbers = #tpu.dot_dimension_numbers<[1], [0], [0], [1], [0, 0, 1, 1], [], []>} : vector<8x128xbf16>, vector<128x384xbf16>, vector<8x384xf32> -> vector<8x384xf32>
    %104 = vector.extract_strided_slice %100 {offsets = [0, 0], sizes = [8, 128], strides = [1, 1]} : vector<8x384xf32> to vector<8x128xf32>
    %105 = vector.extract_strided_slice %100 {offsets = [0, 128], sizes = [8, 128], strides = [1, 1]} : vector<8x384xf32> to vector<8x128xf32>
    %106 = vector.extract_strided_slice %100 {offsets = [0, 256], sizes = [8, 128], strides = [1, 1]} : vector<8x384xf32> to vector<8x128xf32>
    %107 = vector.extract_strided_slice %103 {offsets = [0, 0], sizes = [8, 128], strides = [1, 1]} : vector<8x384xf32> to vector<8x128xf32>
    %108 = vector.extract_strided_slice %103 {offsets = [0, 128], sizes = [8, 128], strides = [1, 1]} : vector<8x384xf32> to vector<8x128xf32>
    %109 = vector.extract_strided_slice %103 {offsets = [0, 256], sizes = [8, 128], strides = [1, 1]} : vector<8x384xf32> to vector<8x128xf32>
    %110 = arith.addf %104, %107 : vector<8x128xf32>
    %111 = arith.negf %110 : vector<8x128xf32>
    %112 = math.exp %111 : vector<8x128xf32>
    %cst_31 = arith.constant 1.000000e+00 : f32
    %113 = vector.broadcast %cst_31 : f32 to vector<8x128xf32>
    %114 = arith.addf %113, %112 : vector<8x128xf32>
    %115 = arith.divf %113, %114 : vector<8x128xf32>
    %116 = arith.addf %105, %108 : vector<8x128xf32>
    %117 = arith.negf %116 : vector<8x128xf32>
    %118 = math.exp %117 : vector<8x128xf32>
    %cst_32 = arith.constant 1.000000e+00 : f32
    %119 = vector.broadcast %cst_32 : f32 to vector<8x128xf32>
    %120 = arith.addf %119, %118 : vector<8x128xf32>
    %121 = arith.divf %119, %120 : vector<8x128xf32>
    %122 = arith.addf %109, %11 : vector<8x128xf32>
    %123 = arith.mulf %115, %122 : vector<8x128xf32>
    %124 = arith.addf %106, %123 : vector<8x128xf32>
    %125 = math.tanh %124 : vector<8x128xf32>
    %126 = arith.subf %99, %125 : vector<8x128xf32>
    %127 = arith.mulf %121, %126 : vector<8x128xf32>
    %128 = arith.addf %125, %127 : vector<8x128xf32>
    %c32 = arith.constant 32 : index
    %c0_33 = arith.constant 0 : index
    %129 = vector.load %arg8[%c32, %c0_33] : memref<64x384xf32, #tpu.memory_space<vmem>>, vector<8x384xf32>
    %130 = arith.truncf %128 : vector<8x128xf32> to vector<8x128xbf16>
    %c0_34 = arith.constant 0 : index
    %c0_35 = arith.constant 0 : index
    %131 = vector.load %arg3[%c0_34, %c0_35] : memref<128x384xbf16, #tpu.memory_space<vmem>>, vector<128x384xbf16>
    %cst_36 = arith.constant dense<0.000000e+00> : vector<8x384xf32>
    %132 = tpu.matmul %130, %131, %cst_36 {dimension_numbers = #tpu.dot_dimension_numbers<[1], [0], [0], [1], [0, 0, 1, 1], [], []>} : vector<8x128xbf16>, vector<128x384xbf16>, vector<8x384xf32> -> vector<8x384xf32>
    %133 = vector.extract_strided_slice %129 {offsets = [0, 0], sizes = [8, 128], strides = [1, 1]} : vector<8x384xf32> to vector<8x128xf32>
    %134 = vector.extract_strided_slice %129 {offsets = [0, 128], sizes = [8, 128], strides = [1, 1]} : vector<8x384xf32> to vector<8x128xf32>
    %135 = vector.extract_strided_slice %129 {offsets = [0, 256], sizes = [8, 128], strides = [1, 1]} : vector<8x384xf32> to vector<8x128xf32>
    %136 = vector.extract_strided_slice %132 {offsets = [0, 0], sizes = [8, 128], strides = [1, 1]} : vector<8x384xf32> to vector<8x128xf32>
    %137 = vector.extract_strided_slice %132 {offsets = [0, 128], sizes = [8, 128], strides = [1, 1]} : vector<8x384xf32> to vector<8x128xf32>
    %138 = vector.extract_strided_slice %132 {offsets = [0, 256], sizes = [8, 128], strides = [1, 1]} : vector<8x384xf32> to vector<8x128xf32>
    %139 = arith.addf %133, %136 : vector<8x128xf32>
    %140 = arith.negf %139 : vector<8x128xf32>
    %141 = math.exp %140 : vector<8x128xf32>
    %cst_37 = arith.constant 1.000000e+00 : f32
    %142 = vector.broadcast %cst_37 : f32 to vector<8x128xf32>
    %143 = arith.addf %142, %141 : vector<8x128xf32>
    %144 = arith.divf %142, %143 : vector<8x128xf32>
    %145 = arith.addf %134, %137 : vector<8x128xf32>
    %146 = arith.negf %145 : vector<8x128xf32>
    %147 = math.exp %146 : vector<8x128xf32>
    %cst_38 = arith.constant 1.000000e+00 : f32
    %148 = vector.broadcast %cst_38 : f32 to vector<8x128xf32>
    %149 = arith.addf %148, %147 : vector<8x128xf32>
    %150 = arith.divf %148, %149 : vector<8x128xf32>
    %151 = arith.addf %138, %11 : vector<8x128xf32>
    %152 = arith.mulf %144, %151 : vector<8x128xf32>
    %153 = arith.addf %135, %152 : vector<8x128xf32>
    %154 = math.tanh %153 : vector<8x128xf32>
    %155 = arith.subf %128, %154 : vector<8x128xf32>
    %156 = arith.mulf %150, %155 : vector<8x128xf32>
    %157 = arith.addf %154, %156 : vector<8x128xf32>
    %c40 = arith.constant 40 : index
    %c0_39 = arith.constant 0 : index
    %158 = vector.load %arg8[%c40, %c0_39] : memref<64x384xf32, #tpu.memory_space<vmem>>, vector<8x384xf32>
    %159 = arith.truncf %157 : vector<8x128xf32> to vector<8x128xbf16>
    %c0_40 = arith.constant 0 : index
    %c0_41 = arith.constant 0 : index
    %160 = vector.load %arg3[%c0_40, %c0_41] : memref<128x384xbf16, #tpu.memory_space<vmem>>, vector<128x384xbf16>
    %cst_42 = arith.constant dense<0.000000e+00> : vector<8x384xf32>
    %161 = tpu.matmul %159, %160, %cst_42 {dimension_numbers = #tpu.dot_dimension_numbers<[1], [0], [0], [1], [0, 0, 1, 1], [], []>} : vector<8x128xbf16>, vector<128x384xbf16>, vector<8x384xf32> -> vector<8x384xf32>
    %162 = vector.extract_strided_slice %158 {offsets = [0, 0], sizes = [8, 128], strides = [1, 1]} : vector<8x384xf32> to vector<8x128xf32>
    %163 = vector.extract_strided_slice %158 {offsets = [0, 128], sizes = [8, 128], strides = [1, 1]} : vector<8x384xf32> to vector<8x128xf32>
    %164 = vector.extract_strided_slice %158 {offsets = [0, 256], sizes = [8, 128], strides = [1, 1]} : vector<8x384xf32> to vector<8x128xf32>
    %165 = vector.extract_strided_slice %161 {offsets = [0, 0], sizes = [8, 128], strides = [1, 1]} : vector<8x384xf32> to vector<8x128xf32>
    %166 = vector.extract_strided_slice %161 {offsets = [0, 128], sizes = [8, 128], strides = [1, 1]} : vector<8x384xf32> to vector<8x128xf32>
    %167 = vector.extract_strided_slice %161 {offsets = [0, 256], sizes = [8, 128], strides = [1, 1]} : vector<8x384xf32> to vector<8x128xf32>
    %168 = arith.addf %162, %165 : vector<8x128xf32>
    %169 = arith.negf %168 : vector<8x128xf32>
    %170 = math.exp %169 : vector<8x128xf32>
    %cst_43 = arith.constant 1.000000e+00 : f32
    %171 = vector.broadcast %cst_43 : f32 to vector<8x128xf32>
    %172 = arith.addf %171, %170 : vector<8x128xf32>
    %173 = arith.divf %171, %172 : vector<8x128xf32>
    %174 = arith.addf %163, %166 : vector<8x128xf32>
    %175 = arith.negf %174 : vector<8x128xf32>
    %176 = math.exp %175 : vector<8x128xf32>
    %cst_44 = arith.constant 1.000000e+00 : f32
    %177 = vector.broadcast %cst_44 : f32 to vector<8x128xf32>
    %178 = arith.addf %177, %176 : vector<8x128xf32>
    %179 = arith.divf %177, %178 : vector<8x128xf32>
    %180 = arith.addf %167, %11 : vector<8x128xf32>
    %181 = arith.mulf %173, %180 : vector<8x128xf32>
    %182 = arith.addf %164, %181 : vector<8x128xf32>
    %183 = math.tanh %182 : vector<8x128xf32>
    %184 = arith.subf %157, %183 : vector<8x128xf32>
    %185 = arith.mulf %179, %184 : vector<8x128xf32>
    %186 = arith.addf %183, %185 : vector<8x128xf32>
    %c48 = arith.constant 48 : index
    %c0_45 = arith.constant 0 : index
    %187 = vector.load %arg8[%c48, %c0_45] : memref<64x384xf32, #tpu.memory_space<vmem>>, vector<8x384xf32>
    %188 = arith.truncf %186 : vector<8x128xf32> to vector<8x128xbf16>
    %c0_46 = arith.constant 0 : index
    %c0_47 = arith.constant 0 : index
    %189 = vector.load %arg3[%c0_46, %c0_47] : memref<128x384xbf16, #tpu.memory_space<vmem>>, vector<128x384xbf16>
    %cst_48 = arith.constant dense<0.000000e+00> : vector<8x384xf32>
    %190 = tpu.matmul %188, %189, %cst_48 {dimension_numbers = #tpu.dot_dimension_numbers<[1], [0], [0], [1], [0, 0, 1, 1], [], []>} : vector<8x128xbf16>, vector<128x384xbf16>, vector<8x384xf32> -> vector<8x384xf32>
    %191 = vector.extract_strided_slice %187 {offsets = [0, 0], sizes = [8, 128], strides = [1, 1]} : vector<8x384xf32> to vector<8x128xf32>
    %192 = vector.extract_strided_slice %187 {offsets = [0, 128], sizes = [8, 128], strides = [1, 1]} : vector<8x384xf32> to vector<8x128xf32>
    %193 = vector.extract_strided_slice %187 {offsets = [0, 256], sizes = [8, 128], strides = [1, 1]} : vector<8x384xf32> to vector<8x128xf32>
    %194 = vector.extract_strided_slice %190 {offsets = [0, 0], sizes = [8, 128], strides = [1, 1]} : vector<8x384xf32> to vector<8x128xf32>
    %195 = vector.extract_strided_slice %190 {offsets = [0, 128], sizes = [8, 128], strides = [1, 1]} : vector<8x384xf32> to vector<8x128xf32>
    %196 = vector.extract_strided_slice %190 {offsets = [0, 256], sizes = [8, 128], strides = [1, 1]} : vector<8x384xf32> to vector<8x128xf32>
    %197 = arith.addf %191, %194 : vector<8x128xf32>
    %198 = arith.negf %197 : vector<8x128xf32>
    %199 = math.exp %198 : vector<8x128xf32>
    %cst_49 = arith.constant 1.000000e+00 : f32
    %200 = vector.broadcast %cst_49 : f32 to vector<8x128xf32>
    %201 = arith.addf %200, %199 : vector<8x128xf32>
    %202 = arith.divf %200, %201 : vector<8x128xf32>
    %203 = arith.addf %192, %195 : vector<8x128xf32>
    %204 = arith.negf %203 : vector<8x128xf32>
    %205 = math.exp %204 : vector<8x128xf32>
    %cst_50 = arith.constant 1.000000e+00 : f32
    %206 = vector.broadcast %cst_50 : f32 to vector<8x128xf32>
    %207 = arith.addf %206, %205 : vector<8x128xf32>
    %208 = arith.divf %206, %207 : vector<8x128xf32>
    %209 = arith.addf %196, %11 : vector<8x128xf32>
    %210 = arith.mulf %202, %209 : vector<8x128xf32>
    %211 = arith.addf %193, %210 : vector<8x128xf32>
    %212 = math.tanh %211 : vector<8x128xf32>
    %213 = arith.subf %186, %212 : vector<8x128xf32>
    %214 = arith.mulf %208, %213 : vector<8x128xf32>
    %215 = arith.addf %212, %214 : vector<8x128xf32>
    %c56 = arith.constant 56 : index
    %c0_51 = arith.constant 0 : index
    %216 = vector.load %arg8[%c56, %c0_51] : memref<64x384xf32, #tpu.memory_space<vmem>>, vector<8x384xf32>
    %217 = arith.truncf %215 : vector<8x128xf32> to vector<8x128xbf16>
    %c0_52 = arith.constant 0 : index
    %c0_53 = arith.constant 0 : index
    %218 = vector.load %arg3[%c0_52, %c0_53] : memref<128x384xbf16, #tpu.memory_space<vmem>>, vector<128x384xbf16>
    %cst_54 = arith.constant dense<0.000000e+00> : vector<8x384xf32>
    %219 = tpu.matmul %217, %218, %cst_54 {dimension_numbers = #tpu.dot_dimension_numbers<[1], [0], [0], [1], [0, 0, 1, 1], [], []>} : vector<8x128xbf16>, vector<128x384xbf16>, vector<8x384xf32> -> vector<8x384xf32>
    %220 = vector.extract_strided_slice %216 {offsets = [0, 0], sizes = [8, 128], strides = [1, 1]} : vector<8x384xf32> to vector<8x128xf32>
    %221 = vector.extract_strided_slice %216 {offsets = [0, 128], sizes = [8, 128], strides = [1, 1]} : vector<8x384xf32> to vector<8x128xf32>
    %222 = vector.extract_strided_slice %216 {offsets = [0, 256], sizes = [8, 128], strides = [1, 1]} : vector<8x384xf32> to vector<8x128xf32>
    %223 = vector.extract_strided_slice %219 {offsets = [0, 0], sizes = [8, 128], strides = [1, 1]} : vector<8x384xf32> to vector<8x128xf32>
    %224 = vector.extract_strided_slice %219 {offsets = [0, 128], sizes = [8, 128], strides = [1, 1]} : vector<8x384xf32> to vector<8x128xf32>
    %225 = vector.extract_strided_slice %219 {offsets = [0, 256], sizes = [8, 128], strides = [1, 1]} : vector<8x384xf32> to vector<8x128xf32>
    %226 = arith.addf %220, %223 : vector<8x128xf32>
    %227 = arith.negf %226 : vector<8x128xf32>
    %228 = math.exp %227 : vector<8x128xf32>
    %cst_55 = arith.constant 1.000000e+00 : f32
    %229 = vector.broadcast %cst_55 : f32 to vector<8x128xf32>
    %230 = arith.addf %229, %228 : vector<8x128xf32>
    %231 = arith.divf %229, %230 : vector<8x128xf32>
    %232 = arith.addf %221, %224 : vector<8x128xf32>
    %233 = arith.negf %232 : vector<8x128xf32>
    %234 = math.exp %233 : vector<8x128xf32>
    %cst_56 = arith.constant 1.000000e+00 : f32
    %235 = vector.broadcast %cst_56 : f32 to vector<8x128xf32>
    %236 = arith.addf %235, %234 : vector<8x128xf32>
    %237 = arith.divf %235, %236 : vector<8x128xf32>
    %238 = arith.addf %225, %11 : vector<8x128xf32>
    %239 = arith.mulf %231, %238 : vector<8x128xf32>
    %240 = arith.addf %222, %239 : vector<8x128xf32>
    %241 = math.tanh %240 : vector<8x128xf32>
    %242 = arith.subf %215, %241 : vector<8x128xf32>
    %243 = arith.mulf %237, %242 : vector<8x128xf32>
    %244 = arith.addf %241, %243 : vector<8x128xf32>
    %245 = arith.truncf %244 : vector<8x128xf32> to vector<8x128xbf16>
    %c0_57 = arith.constant 0 : index
    %c0_58 = arith.constant 0 : index
    %246 = vector.load %arg5[%c0_57, %c0_58] : memref<128x128xbf16, #tpu.memory_space<vmem>>, vector<128x128xbf16>
    %cst_59 = arith.constant dense<0.000000e+00> : vector<8x128xf32>
    %247 = tpu.matmul %245, %246, %cst_59 {dimension_numbers = #tpu.dot_dimension_numbers<[1], [0], [0], [1], [0, 0, 1, 1], [], []>} : vector<8x128xbf16>, vector<128x128xbf16>, vector<8x128xf32> -> vector<8x128xf32>
    %c0_60 = arith.constant 0 : index
    %c0_61 = arith.constant 0 : index
    %248 = vector.load %arg6[%c0_60, %c0_61] : memref<1x128xf32, #tpu.memory_space<vmem>>, vector<1x128xf32>
    %249 = vector.broadcast %248 : vector<1x128xf32> to vector<8x128xf32>
    %250 = arith.addf %247, %249 : vector<8x128xf32>
    %c0_62 = arith.constant 0 : index
    %c0_63 = arith.constant 0 : index
    %251 = vector.load %arg7[%c0_62, %c0_63] : memref<8x128xf32, #tpu.memory_space<vmem>>, vector<8x128xf32>
    tpu.vector_store %arg7[%c0_62, %c0_63], %250 {strides = array<i32>} : memref<8x128xf32, #tpu.memory_space<vmem>>, vector<8x128xf32>,
    return
  }
  func.func @transform_0(%arg0: i32) -> (i32, i32) {
    %c0_i32 = arith.constant 0 : i32
    %c0_i32_0 = arith.constant 0 : i32
    %c0_i32_1 = arith.constant 0 : i32
    return %c0_i32, %c0_i32_0 : i32, i32
  }
  func.func @transform_1(%arg0: i32) -> (i32, i32) {
    %c0_i32 = arith.constant 0 : i32
    %c0_i32_0 = arith.constant 0 : i32
    %c0_i32_1 = arith.constant 0 : i32
    return %c0_i32, %c0_i32_0 : i32, i32
  }
  func.func @transform_2(%arg0: i32) -> (i32, i32) {
    %c0_i32 = arith.constant 0 : i32
    %c0_i32_0 = arith.constant 0 : i32
    %c0_i32_1 = arith.constant 0 : i32
    return %c0_i32, %c0_i32_0 : i32, i32
  }
  func.func @transform_3(%arg0: i32) -> (i32, i32) {
    %c0_i32 = arith.constant 0 : i32
    %c0_i32_0 = arith.constant 0 : i32
    %c0_i32_1 = arith.constant 0 : i32
    return %c0_i32, %c0_i32_0 : i32, i32
  }
  func.func @transform_4(%arg0: i32) -> (i32, i32) {
    %c0_i32 = arith.constant 0 : i32
    %c0_i32_0 = arith.constant 0 : i32
    %c0_i32_1 = arith.constant 0 : i32
    return %c0_i32, %c0_i32_0 : i32, i32
  }
  func.func @transform_5(%arg0: i32) -> (i32, i32) {
    %c0_i32 = arith.constant 0 : i32
    %c0_i32_0 = arith.constant 0 : i32
    %c0_i32_1 = arith.constant 0 : i32
    return %c0_i32, %c0_i32_0 : i32, i32
  }
  func.func @transform_6(%arg0: i32) -> (i32, i32) {
    %c0_i32 = arith.constant 0 : i32
    %c0_i32_0 = arith.constant 0 : i32
    %c0_i32_1 = arith.constant 0 : i32
    return %c0_i32, %c0_i32_0 : i32, i32
  }
}

</mosaic_0001>

<bundles_post_ra>
// kernel: tpu_custom_call.1
= control target key start
LH: loop header
LB: loop body
LE: loop exit
PB: predicated region body
PF: predicated region fallthrough
CT: control target
= control target key end

     0   :  { %11 = vsyncpa [#allocation4], 0  ;;  %s2758_s0 = inlined_call_operand.vmem [shape: s32[64,1], index: 0, kind: input, shape index: {}]   ;;  %s2759_s1 = inlined_call_operand.hbm [shape: f32[128,384], index: 1, kind: input, shape index: {}]   ;;  %s2760_s2 = inlined_call_operand.hbm [shape: bf16[128,384], index: 2, kind: input, shape index: {}]   ;;  %s2761_s3 = inlined_call_operand.vmem [shape: f32[1,128], index: 3, kind: input, shape index: {}]   ;;  %s2762_s4 = inlined_call_operand.vmem [shape: bf16[128,128], index: 4, kind: input, shape index: {}]   ;;  %s2763_s5 = inlined_call_operand.vmem [shape: f32[1,128], index: 5, kind: input, shape index: {}]   ;;  %s2764_s6 = inlined_call_operand.hbm [shape: f32[8,128], index: 6, kind: output, shape index: {}]  }
   0x1   :  { %12 = vsyncpa [#allocation7], 0 }
   0x2   :  { %13 = vsyncpa [#allocation5], 0  ;;  %s2152_s21 = smov [#allocation3]  }
   0x3   :  { %s21_s22 = sshll.u32 %s2152_s21, 4  ;;  %s22_s22 = int_to_ptr.vmem [resolvable:$true] %s21_s22 }
   0x4   :  { %s2094_s23 = scalar_lea.vmem %s22_s22, 6144  ;;  %p2099_p1 = scmp.lt.s32.totalorder %s22_s22, %s22_s22 }
   0x5   :  { %p2095_p0 = scmp.ne.s32.totalorder %s22_s22, %s2094_s23  ;;  %p2100_p2 = scmp.lt.s32.totalorder %s2094_s23, %s2094_s23 }
   0x7   :  { %p2101_p3 = por %p2100_p2, %p2099_p1 }
   0x9   :  { %p2102_p4 = pnand %p2101_p3, %p2095_p0 }
   0xb   :  { %2105 = shalt.err (!%p2102_p4)
}
   0xc   :  { %s2153_s24 = smov 384   ;;  %s2154_s25 = smov 24  }
   0xd   :  { %27 = dma.hbm_to_vmem [thread:$0]  %s2759_s1, 6144, %s22_s22, [#allocation4], %s2153_s24, %s2153_s24, %s2154_s25  }
   0xe   :  { %s2155_s28 = smov [#allocation6]  }
   0xf   :  { %s33_s29 = sshll.u32 %s2155_s28, 4  ;;  %s34_s29 = int_to_ptr.vmem [resolvable:$true] %s33_s29 }
  0x10   :  { %s2114_s30 = scalar_lea.vmem %s34_s29, 3072  ;;  %p2119_p6 = scmp.lt.s32.totalorder %s34_s29, %s34_s29 }
  0x11   :  { %p2115_p5 = scmp.ne.s32.totalorder %s34_s29, %s2114_s30  ;;  %p2120_p7 = scmp.lt.s32.totalorder %s2114_s30, %s2114_s30 }
  0x13   :  { %p2121_p8 = por %p2120_p7, %p2119_p6 }
  0x15   :  { %p2122_p9 = pnand %p2121_p8, %p2115_p5 }
  0x17   :  { %2125 = shalt.err (!%p2122_p9)
}
  0x18   :  { %s2156_s7 = smov 192   ;;  %s2157_s8 = smov 12  }
  0x19   :  { %39 = dma.hbm_to_vmem [thread:$0]  %s2760_s2, 3072, %s34_s29, [#allocation7], %s2156_s7, %s2156_s7, %s2157_s8  }
  0x1a   :  { %2146 = dma.done.wait [#allocation4], 6144  }
  0x1b   :  { %2147 = vsyncadd [#allocation4], 4294961152 }
  0x1c   :  { %2148 = dma.done.wait [#allocation7], 3072  }
  0x1d   :  { %2149 = vsyncadd [#allocation7], 4294964224  ;;  %v2765_v0 = vmov 0   ;;  %v2767_v1 = vmov 0.0   ;;  %v57_v2 = vld [vmem:[%s2758_s0 + $0x10] sm:$0xff]  ;;  %v55_v3 = vld [vmem:[%s2758_s0] sm:$0xff]  ;;  %v53_v59 = vlaneseq }
  0x1e   :  { %1959 = vset.pattern.permute.xlu1 %v2765_v0  ;;  %1958 = vset.pattern.permute.xlu0 %v2765_v0  ;;  %v58_v4 = vld [vmem:[%s2758_s0 + $0x18] sm:$0xff]  ;;  %v56_v5 = vld [vmem:[%s2758_s0 + $0x8] sm:$0xff]  ;;  %v157_v6 = vld [vmem:[#allocation3 + $0x170] sm:$0xff]  ;;  %vm2161_vm8 = vmmov 0   ;;  %s2162_s16 = smov [#allocation8]  }
  0x1f   :  { %223 = vmatprep.mubr.f32.mxu0 %v2767_v1  ;;  %70 = vperm.xlu1 %1959, %v57_v2   ;;  %v156_v7 = vld [vmem:[#allocation3 + $0x168] sm:$0xff]  ;;  %v154_v8 = vld [vmem:[#allocation3 + $0x158] sm:$0xff]  ;;  %v153_v9 = vld [vmem:[#allocation3 + $0x150] sm:$0xff]  ;;  %v2235_v60 = vand.u32 127, %v53_v59  ;;  %s1534_s17 = sshll.u32 %s2162_s16, 4  ;;  %s1535_s17 = int_to_ptr.vmem [resolvable:$true] %s1534_s17 }
  0x20   :  { %64 = vperm.xlu0 %1958, %v55_v3   ;;  %159 = vmatprep.subr.mxu0 %v157_v6  ;;  %v158_v10 = vld [vmem:[#allocation3 + $0x178] sm:$0xff]  ;;  %v151_v11 = vld [vmem:[#allocation3 + $0x140] sm:$0xff]  ;;  %v60_v13 = vld [vmem:[%s2758_s0 + $0x28] sm:$0xff]  ;;  %v2160_v3 = vmov 1.0   ;;  %s2126_s18 = scalar_lea.vmem %s1535_s17, 128  ;;  %p2131_p11 = scmp.lt.s32.totalorder %s1535_s17, %s1535_s17 }
  0x21   :  { %160 = vmatpush1.msra.mxu0 %v156_v7  ;;  %v155_v12 = vld [vmem:[#allocation3 + $0x160] sm:$0xff]  ;;  %1723 = vmatprep.subr.mxu1 %v158_v10  ;;  %v150_v15 = vld [vmem:[#allocation3 + $0x138] sm:$0xff]  ;;  %v148_v16 = vld [vmem:[#allocation3 + $0x128] sm:$0xff]  ;;  %p2127_p10 = scmp.ne.s32.totalorder %s1535_s17, %s2126_s18  ;;  %p2132_p12 = scmp.lt.s32.totalorder %s2126_s18, %s2126_s18 }
  0x22   :  { %v59_v14 = vld [vmem:[%s2758_s0 + $0x20] sm:$0xff]  ;;  %161 = vmatprep.subr.mxu0 %v154_v8  ;;  %1724 = vmatpush3.msra.mxu1 %v158_v10  ;;  %v152_v17 = vld [vmem:[#allocation3 + $0x148] sm:$0xff]  ;;  %v62_v19 = vld [vmem:[%s2758_s0 + $0x38] sm:$0xff] }
  0x23   :  { %73 = vperm.xlu1 %1959, %v58_v4   ;;  %162 = vmatpush1.msra.mxu0 %v153_v9  ;;  %v147_v18 = vld [vmem:[#allocation3 + $0x120] sm:$0xff]  ;;  %v61_v20 = vld [vmem:[%s2758_s0 + $0x30] sm:$0xff]  ;;  %v144_v23 = vld [vmem:[#allocation3 + $0x108] sm:$0xff]  ;;  %p2133_p13 = por %p2132_p12, %p2131_p11 }
  0x24   :  { %67 = vperm.xlu0 %1958, %v56_v5   ;;  %163 = vmatprep.subr.mxu0 %v151_v11  ;;  %v145_v21 = vld [vmem:[#allocation3 + $0x110] sm:$0xff]  ;;  %v142_v24 = vld [vmem:[#allocation3 + $0xf8] sm:$0xff]  ;;  %v139_v27 = vld [vmem:[#allocation3 + $0xe0] sm:$0xff] }
  0x25   :  { %1725 = vmatprep.subr.mxu1 %v155_v12  ;;  %164 = vmatpush1.msra.mxu0 %v150_v15  ;;  %v149_v22 = vld [vmem:[#allocation3 + $0x130] sm:$0xff]  ;;  %v146_v25 = vld [vmem:[#allocation3 + $0x118] sm:$0xff]  ;;  %v143_v28 = vld [vmem:[#allocation3 + $0x100] sm:$0xff]  ;;  %p2134_p0 = pnand %p2133_p13, %p2127_p10 }
  0x26   :  { %1726 = vmatpush3.msra.mxu1 %v155_v12  ;;  %165 = vmatprep.subr.mxu0 %v148_v16  ;;  %v141_v26 = vld [vmem:[#allocation3 + $0xf0] sm:$0xff]  ;;  %v138_v29 = vld [vmem:[#allocation3 + $0xd8] sm:$0xff]  ;;  %v136_v30 = vld [vmem:[#allocation3 + $0xc8] sm:$0xff] }
  0x27   :  { %79 = vperm.xlu1 %1959, %v60_v13   ;;  %1727 = vmatprep.subr.mxu1 %v152_v17  ;;  %v135_v31 = vld [vmem:[#allocation3 + $0xc0] sm:$0xff]  ;;  %v140_v32 = vld [vmem:[#allocation3 + $0xe8] sm:$0xff]  ;;  %v133_v33 = vld [vmem:[#allocation3 + $0xb0] sm:$0xff] }
  0x28   :  { %76 = vperm.xlu0 %1958, %v59_v14   ;;  %166 = vmatpush1.msra.mxu0 %v147_v18  ;;  %v132_v34 = vld [vmem:[#allocation3 + $0xa8] sm:$0xff]  ;;  %v130_v35 = vld [vmem:[#allocation3 + $0x98] sm:$0xff]  ;;  %v137_v36 = vld [vmem:[#allocation3 + $0xd0] sm:$0xff] }
  0x29   :  { %1728 = vmatpush3.msra.mxu1 %v152_v17  ;;  %167 = vmatprep.subr.mxu0 %v145_v21  ;;  %v129_v37 = vld [vmem:[#allocation3 + $0x90] sm:$0xff]  ;;  %v134_v38 = vld [vmem:[#allocation3 + $0xb8] sm:$0xff]  ;;  %v127_v39 = vld [vmem:[#allocation3 + $0x80] sm:$0xff] }
  0x2a   :  { %1729 = vmatprep.subr.mxu1 %v149_v22  ;;  %168 = vmatpush1.msra.mxu0 %v144_v23  ;;  %v126_v40 = vld [vmem:[#allocation3 + $0x78] sm:$0xff]  ;;  %v124_v41 = vld [vmem:[#allocation3 + $0x68] sm:$0xff]  ;;  %v131_v42 = vld [vmem:[#allocation3 + $0xa0] sm:$0xff] }
  0x2b   :  { %85 = vperm.xlu1 %1959, %v62_v19   ;;  %1730 = vmatpush3.msra.mxu1 %v149_v22  ;;  %v123_v43 = vld [vmem:[#allocation3 + $0x60] sm:$0xff]  ;;  %v128_v44 = vld [vmem:[#allocation3 + $0x88] sm:$0xff]  ;;  %v121_v45 = vld [vmem:[#allocation3 + $0x50] sm:$0xff] }
  0x2c   :  { %82 = vperm.xlu0 %1958, %v61_v20   ;;  %169 = vmatprep.subr.mxu0 %v142_v24  ;;  %v120_v46 = vld [vmem:[#allocation3 + $0x48] sm:$0xff]  ;;  %v118_v47 = vld [vmem:[#allocation3 + $0x38] sm:$0xff]  ;;  %v125_v48 = vld [vmem:[#allocation3 + $0x70] sm:$0xff] }
  0x2d   :  { %1731 = vmatprep.subr.mxu1 %v146_v25  ;;  %170 = vmatpush1.msra.mxu0 %v141_v26  ;;  %v117_v49 = vld [vmem:[#allocation3 + $0x30] sm:$0xff]  ;;  %v115_v50 = vld [vmem:[#allocation3 + $0x20] sm:$0xff]  ;;  %v122_v51 = vld [vmem:[#allocation3 + $0x58] sm:$0xff] }
  0x2e   :  { %1732 = vmatpush3.msra.mxu1 %v146_v25  ;;  %171 = vmatprep.subr.mxu0 %v139_v27  ;;  %v114_v52 = vld [vmem:[#allocation3 + $0x18] sm:$0xff]  ;;  %v112_v53 = vld [vmem:[#allocation3 + $0x8] sm:$0xff]  ;;  %v119_v54 = vld [vmem:[#allocation3 + $0x40] sm:$0xff] }
  0x2f   :  { %1733 = vmatprep.subr.mxu1 %v143_v28  ;;  %172 = vmatpush1.msra.mxu0 %v138_v29  ;;  %v111_v55 = vld [vmem:[#allocation3] sm:$0xff]  ;;  %v116_v56 = vld [vmem:[#allocation3 + $0x28] sm:$0xff]  ;;  %v113_v58 = vld [vmem:[#allocation3 + $0x10] sm:$0xff] }
  0x30   :  { %1734 = vmatpush3.msra.mxu1 %v143_v28  ;;  %173 = vmatprep.subr.mxu0 %v136_v30  ;;  %v2231_v57 = vld [vmem:[#allocation6 + $0xac] ss:$12 sps:$4 sm:$0xff]   ;;  %v2237_v61 = vld [vmem:[#allocation6 + $0xa8] ss:$12 sps:$4 sm:$0xff]   ;;  %v2246_v4 = vld [vmem:[#allocation6 + $0x90] ss:$12 sps:$4 sm:$0xff]  }
  0x31   :  { %1735 = vmatprep.subr.mxu1 %v140_v32  ;;  %174 = vmatpush1.msra.mxu0 %v135_v31  ;;  %v2239_v2 = vld [vmem:[#allocation6 + $0x94] ss:$12 sps:$4 sm:$0xff]   ;;  %v2249_v7 = vld [vmem:[#allocation6 + $0x7c] ss:$12 sps:$4 sm:$0xff]   ;;  %v2260_v9 = vld [vmem:[#allocation6 + $0x78] ss:$12 sps:$4 sm:$0xff]  }
  0x32   :  { %1736 = vmatpush3.msra.mxu1 %v140_v32  ;;  %175 = vmatprep.subr.mxu0 %v133_v33  ;;  %v2253_v8 = vld [vmem:[#allocation6 + $0xb0] ss:$12 sps:$4 sm:$0xff]   ;;  %v2280_v13 = vld [vmem:[#allocation6 + $0x60] ss:$12 sps:$4 sm:$0xff]   ;;  %v2289_v16 = vld [vmem:[#allocation6 + $0x98] ss:$12 sps:$4 sm:$0xff]  }
  0x33   :  { %1737 = vmatprep.subr.mxu1 %v137_v36  ;;  %176 = vmatpush1.msra.mxu0 %v132_v34  ;;  %v2266_v12 = vld [vmem:[#allocation6 + $0x64] ss:$12 sps:$4 sm:$0xff]   ;;  %v2284_v15 = vld [vmem:[#allocation6 + $0x4c] ss:$12 sps:$4 sm:$0xff]   ;;  %v2301_v18 = vld [vmem:[#allocation6 + $0x48] ss:$12 sps:$4 sm:$0xff]  }
  0x34   :  { %1738 = vmatpush3.msra.mxu1 %v137_v36  ;;  %177 = vmatprep.subr.mxu0 %v130_v35  ;;  %v2305_v19 = vld [vmem:[#allocation6 + $0x34] ss:$12 sps:$4 sm:$0xff]   ;;  %v2319_v21 = vld [vmem:[#allocation6 + $0x30] ss:$12 sps:$4 sm:$0xff]   ;;  %v2336_v24 = vld [vmem:[#allocation6 + $0x18] ss:$12 sps:$4 sm:$0xff]  }
  0x35   :  { %1739 = vmatprep.subr.mxu1 %v134_v38  ;;  %178 = vmatpush1.msra.mxu0 %v129_v37  ;;  %v2309_v20 = vld [vmem:[#allocation6 + $0x80] ss:$12 sps:$4 sm:$0xff]   ;;  %v2322_v22 = vld [vmem:[#allocation6 + $0x1c] ss:$12 sps:$4 sm:$0xff]   ;;  %v2339_v25 = vld [vmem:[#allocation6 + $0x4] ss:$12 sps:$4 sm:$0xff]  }
  0x36   :  { %1740 = vmatpush3.msra.mxu1 %v134_v38  ;;  %179 = vmatprep.subr.mxu0 %v127_v39  ;;  %v2326_v23 = vld [vmem:[#allocation6 + $0x68] ss:$12 sps:$4 sm:$0xff]   ;;  %v2342_v26 = vld [vmem:[#allocation6 + $0x50] ss:$12 sps:$4 sm:$0xff]   ;;  %v2350_v27 = vld [vmem:[#allocation6] ss:$12 sps:$4 sm:$0xff]  }
  0x37   :  { %1741 = vmatprep.subr.mxu1 %v131_v42  ;;  %180 = vmatpush1.msra.mxu0 %v126_v40  ;;  %v2354_v28 = vld [vmem:[#allocation6 + $0x38] ss:$12 sps:$4 sm:$0xff]   ;;  %v2364_v29 = vld [vmem:[#allocation6 + $0x20] ss:$12 sps:$4 sm:$0xff]   ;;  %v2372_v30 = vld [vmem:[#allocation6 + $0x8] ss:$12 sps:$4 sm:$0xff]  }
  0x38   :  { %1742 = vmatpush3.msra.mxu1 %v131_v42  ;;  %181 = vmatprep.subr.mxu0 %v124_v41 }
  0x39   :  { %1743 = vmatprep.subr.mxu1 %v128_v44  ;;  %182 = vmatpush1.msra.mxu0 %v123_v43 }
  0x3a   :  { %1744 = vmatpush3.msra.mxu1 %v128_v44  ;;  %183 = vmatprep.subr.mxu0 %v121_v45 }
  0x3b   :  { %1745 = vmatprep.subr.mxu1 %v125_v48  ;;  %184 = vmatpush1.msra.mxu0 %v120_v46 }
  0x3c   :  { %1746 = vmatpush3.msra.mxu1 %v125_v48  ;;  %185 = vmatprep.subr.mxu0 %v118_v47 }
  0x3d   :  { %1747 = vmatprep.subr.mxu1 %v122_v51  ;;  %186 = vmatpush1.msra.mxu0 %v117_v49 }
  0x3e   :  { %1748 = vmatpush3.msra.mxu1 %v122_v51  ;;  %187 = vmatprep.subr.mxu0 %v115_v50 }
  0x3f   :  { %1749 = vmatprep.subr.mxu1 %v119_v54  ;;  %188 = vmatpush1.msra.mxu0 %v114_v52 }
  0x40   :  { %1750 = vmatpush3.msra.mxu1 %v119_v54  ;;  %189 = vmatprep.subr.mxu0 %v112_v53 }
  0x41   :  { %1751 = vmatprep.subr.mxu1 %v116_v56  ;;  %190 = vmatpush1.msra.mxu0 %v111_v55 }
  0x42   :  { %1752 = vmatpush3.msra.mxu1 %v116_v56  ;;  %571 = vmatprep.subr.bf16.mxu0 %v2231_v57 }
  0x43   :  { %1753 = vmatprep.subr.mxu1 %v113_v58 }
  0x44   :  { %1754 = vmatpush3.msra.mxu1 %v113_v58 }
  0x45   :  { %1767 = vmatprep.subr.bf16.mxu1 %v2767_v1 }
  0x9a   :  { %v71_v62 = vpop.permute.xlu1 %70 }
  0x9b   :  { %v65_v63 = vpop.permute.xlu0 %64  ;;  %vm89_vm1 = vcmp.eq.s32.totalorder %v2235_v60, %v71_v62 }
  0x9c   :  { %vm87_vm0 = vcmp.eq.s32.totalorder %v2235_v60, %v65_v63 }
  0x9d   :  { %1552 = vmatmul.mubr.msk.f32.vlgmr.msra.gmra.mxu0 %vm87_vm0, %v2160_v3  ;;  %1755 = vmatprep.mubr.msk.f32.mxu1 %vm87_vm0, %v2160_v3 }
  0x9e   :  { %572 = vmatpush1.bf16.msra.mxu0 %v2237_v61  ;;  %229 = vmatprep.mubr.f32.mxu0 %v2767_v1  ;;  %v74_v5 = vpop.permute.xlu1 %73 }
  0x9f   :  { %v68_v6 = vpop.permute.xlu0 %67  ;;  %573 = vmatprep.subr.bf16.mxu0 %v2239_v2  ;;  %vm90_vm3 = vcmp.eq.s32.totalorder %v2235_v60, %v74_v5 }
  0xa0   :  { %vm88_vm2 = vcmp.eq.s32.totalorder %v2235_v60, %v68_v6 }
  0xa1   :  { %1553 = vmatmul.mubr.msk.f32.gmra.mxu0 %vm88_vm2, %v2160_v3  ;;  %1756 = vmatmul.mubr.msk.f32.vlgmr.msra.gmra.mxu1 %vm88_vm2, %v2160_v3 }
  0xa2   :  { %574 = vmatpush1.bf16.msra.mxu0 %v2246_v4  ;;  %235 = vmatprep.mubr.f32.mxu0 %v2767_v1  ;;  %v80_v10 = vpop.permute.xlu1 %79 }
  0xa3   :  { %v77_v11 = vpop.permute.xlu0 %76  ;;  %1758 = vmatprep.mubr.msk.f32.mxu1 %vm89_vm1, %v2160_v3  ;;  %575 = vmatprep.subr.bf16.mxu0 %v2249_v7  ;;  %vm92_vm5 = vcmp.eq.s32.totalorder %v2235_v60, %v80_v10 }
  0xa4   :  { %vm91_vm4 = vcmp.eq.s32.totalorder %v2235_v60, %v77_v11  ;;  %1768 = vmatpush3.bf16.msra.mxu1 %v2253_v8 }
  0xa5   :  { %1554 = vmatmul.mubr.msk.f32.gmra.mxu0 %vm89_vm1, %v2160_v3  ;;  %1759 = vmatmul.mubr.msk.f32.gmra.mxu1 %vm90_vm3, %v2160_v3 }
  0xa6   :  { %576 = vmatpush1.bf16.msra.mxu0 %v2260_v9  ;;  %1761 = vmatprep.mubr.msk.f32.mxu1 %vm91_vm4, %v2160_v3  ;;  %v86_v17 = vpop.permute.xlu1 %85 }
  0xa7   :  { %v83_v14 = vpop.permute.xlu0 %82  ;;  %241 = vmatprep.mubr.f32.mxu0 %v2767_v1  ;;  %577 = vmatprep.subr.bf16.mxu0 %v2266_v12  ;;  %vm94_vm7 = vcmp.eq.s32.totalorder %v2235_v60, %v86_v17 }
  0xa8   :  { %vm93_vm6 = vcmp.eq.s32.totalorder %v2235_v60, %v83_v14  ;;  %1769 = vmatprep.subr.bf16.mxu1 %v2767_v1 }
  0xa9   :  { %1555 = vmatmul.mubr.msk.f32.gmra.mxu0 %vm90_vm3, %v2160_v3  ;;  %1762 = vmatmul.mubr.msk.f32.gmra.mxu1 %vm92_vm5, %v2160_v3 }
  0xaa   :  { %578 = vmatpush1.bf16.msra.mxu0 %v2280_v13  ;;  %1764 = vmatprep.mubr.msk.f32.mxu1 %vm93_vm6, %v2160_v3 }
  0xab   :  { %247 = vmatprep.mubr.f32.mxu0 %v2767_v1  ;;  %579 = vmatprep.subr.bf16.mxu0 %v2284_v15 }
  0xac   :  { %1770 = vmatpush3.bf16.msra.mxu1 %v2289_v16 }
  0xad   :  { %1556 = vmatmul.mubr.msk.f32.gmra.mxu0 %vm91_vm4, %v2160_v3  ;;  %1765 = vmatmul.mubr.msk.f32.gmra.mxu1 %vm94_vm7, %v2160_v3 }
  0xae   :  { %580 = vmatpush1.bf16.msra.mxu0 %v2301_v18  ;;  %253 = vmatprep.mubr.f32.mxu0 %v2767_v1 }
  0xaf   :  { %581 = vmatprep.subr.bf16.mxu0 %v2305_v19  ;;  %1771 = vmatprep.subr.bf16.mxu1 %v2767_v1 }
  0xb0   :  { %1772 = vmatpush3.bf16.msra.mxu1 %v2309_v20  ;;  %1783 = vmatprep.mubr.msk.bf16.mxu1 %vm2161_vm8, %v2767_v1 }
  0xb1   :  { %1557 = vmatmul.mubr.msk.f32.gmra.mxu0 %vm92_vm5, %v2160_v3  ;;  %1773 = vmatprep.subr.bf16.mxu1 %v2767_v1 }
  0xb2   :  { %582 = vmatpush1.bf16.msra.mxu0 %v2319_v21  ;;  %259 = vmatprep.mubr.f32.mxu0 %v2767_v1 }
  0xb3   :  { %583 = vmatprep.subr.bf16.mxu0 %v2322_v22 }
  0xb4   :  { %1774 = vmatpush3.bf16.msra.mxu1 %v2326_v23 }
  0xb5   :  { %1558 = vmatmul.mubr.msk.f32.gmra.mxu0 %vm93_vm6, %v2160_v3  ;;  %1775 = vmatprep.subr.bf16.mxu1 %v2767_v1 }
  0xb6   :  { %584 = vmatpush1.bf16.msra.mxu0 %v2336_v24  ;;  %265 = vmatprep.mubr.f32.mxu0 %v2767_v1 }
  0xb7   :  { %585 = vmatprep.subr.bf16.mxu0 %v2339_v25 }
  0xb8   :  { %1776 = vmatpush3.bf16.msra.mxu1 %v2342_v26 }
  0xb9   :  { %1559 = vmatmul.mubr.msk.f32.gmra.mxu0 %vm94_vm7, %v2160_v3  ;;  %1777 = vmatprep.subr.bf16.mxu1 %v2767_v1 }
  0xba   :  { %586 = vmatpush1.bf16.msra.mxu0 %v2350_v27  ;;  %603 = vmatprep.mubr.bf16.mxu0 %v2765_v0 }
  0xbb   :  { %677 = vmatprep.subr.bf16.mxu0 %v2231_v57 }
  0xbc   :  { %1778 = vmatpush3.bf16.msra.mxu1 %v2354_v28 }
  0xbd   :  { %604 = vmatmul.mubr.bf16.vlgmr.msra.gmra.mxu0 %v2765_v0  ;;  %1779 = vmatprep.subr.bf16.mxu1 %v2767_v1 }
  0xbe   :  { %678 = vmatpush1.bf16.msra.mxu0 %v2237_v61  ;;  %709 = vmatprep.mubr.bf16.mxu0 %v2765_v0 }
  0xbf   :  { %679 = vmatprep.subr.bf16.mxu0 %v2239_v2 }
  0xc0   :  { %1780 = vmatpush3.bf16.msra.mxu1 %v2364_v29 }
  0xc1   :  { %1781 = vmatprep.subr.bf16.mxu1 %v2767_v1 }
  0xc2   :  { %680 = vmatpush1.bf16.msra.mxu0 %v2246_v4 }
  0xc3   :  { %681 = vmatprep.subr.bf16.mxu0 %v2249_v7 }
  0xc4   :  { %1782 = vmatpush3.bf16.msra.mxu1 %v2372_v30 }
  0xc5   :  { %1787 = vmatprep.subr.bf16.mxu1 %v2767_v1 }
  0xc6   :  { %682 = vmatpush1.bf16.msra.mxu0 %v2260_v9 }
  0xc7   :  { %1784 = vmatmul.mubr.bf16.vlgmr.msra.gmra.mxu1 %v2765_v0  ;;  %683 = vmatprep.subr.bf16.mxu0 %v2266_v12 }
  0xc8   :  { %1788 = vmatpush3.bf16.msra.mxu1 %v2253_v8  ;;  %1803 = vmatprep.mubr.msk.bf16.mxu1 %vm2161_vm8, %v2767_v1 }
  0xc9   :  { %1789 = vmatprep.subr.bf16.mxu1 %v2767_v1 }
  0xca   :  { %684 = vmatpush1.bf16.msra.mxu0 %v2280_v13 }
  0xcb   :  { %685 = vmatprep.subr.bf16.mxu0 %v2284_v15 }
  0xcc   :  { %1790 = vmatpush3.bf16.msra.mxu1 %v2289_v16 }
  0xcd   :  { %1791 = vmatprep.subr.bf16.mxu1 %v2767_v1 }
  0xce   :  { %686 = vmatpush1.bf16.msra.mxu0 %v2301_v18 }
  0xcf   :  { %687 = vmatprep.subr.bf16.mxu0 %v2305_v19 }
  0xd0   :  { %1792 = vmatpush3.bf16.msra.mxu1 %v2309_v20 }
  0xd1   :  { %1793 = vmatprep.subr.bf16.mxu1 %v2767_v1 }
  0xd2   :  { %688 = vmatpush1.bf16.msra.mxu0 %v2319_v21 }
  0xd3   :  { %689 = vmatprep.subr.bf16.mxu0 %v2322_v22 }
  0xd4   :  { %1794 = vmatpush3.bf16.msra.mxu1 %v2326_v23 }
  0xd5   :  { %1795 = vmatprep.subr.bf16.mxu1 %v2767_v1 }
  0xd6   :  { %690 = vmatpush1.bf16.msra.mxu0 %v2336_v24 }
  0xd7   :  { %691 = vmatprep.subr.bf16.mxu0 %v2339_v25 }
  0xd8   :  { %1796 = vmatpush3.bf16.msra.mxu1 %v2342_v26 }
  0xd9   :  { %1797 = vmatprep.subr.bf16.mxu1 %v2767_v1 }
  0xda   :  { %692 = vmatpush1.bf16.msra.mxu0 %v2350_v27 }
  0xdb   :  { %783 = vmatprep.subr.bf16.mxu0 %v2231_v57 }
  0xdc   :  { %1798 = vmatpush3.bf16.msra.mxu1 %v2354_v28 }
  0xdd   :  { %1799 = vmatprep.subr.bf16.mxu1 %v2767_v1 }
  0xe0   :  { %1800 = vmatpush3.bf16.msra.mxu1 %v2364_v29 }
  0xe1   :  { %1801 = vmatprep.subr.bf16.mxu1 %v2767_v1 }
  0xe4   :  { %1802 = vmatpush3.bf16.msra.mxu1 %v2372_v30 }
  0xe5   :  { %1807 = vmatprep.subr.bf16.mxu1 %v2767_v1 }
 0x15d   :  { %v225_v31 = vpop.f32.mrf.mxu0 }
 0x15f   :  { %v227_v32 = vpop.f32.mrf.mxu0 }
 0x161   :  { %v2410_v33 = vpop.f32.mrf.mxu0  ;;  %v2418_v37 = vpop.f32.mrf.mxu1 }
 0x163   :  { %v2412_v34 = vpop.f32.mrf.mxu0  ;;  %v338_v40 = vpop.f32.mrf.mxu1 }
 0x165   :  { %v2414_v35 = vpop.f32.mrf.mxu0  ;;  %v2428_v43 = vpop.f32.mrf.mxu1 }
 0x167   :  { %v2416_v36 = vpop.f32.mrf.mxu0  ;;  %v2434_v46 = vpop.f32.mrf.mxu1 }
 0x169   :  { %v2420_v38 = vpop.f32.mrf.mxu0  ;;  %v2440_v49 = vpop.f32.mrf.mxu1 }
 0x16b   :  { %v2422_v39 = vpop.f32.mrf.mxu0  ;;  %v2446_v52 = vpop.f32.mrf.mxu1 }
 0x16d   :  { %v2424_v41 = vpop.f32.mrf.mxu0  ;;  %v2448_v58 = vpop.f32.mrf.mxu1 }
 0x16f   :  { %v2426_v42 = vpop.f32.mrf.mxu0  ;;  %v2450_v62 = vpop.f32.mrf.mxu1 }
 0x171   :  { %v2430_v44 = vpop.f32.mrf.mxu0 }
 0x173   :  { %v2432_v45 = vpop.f32.mrf.mxu0 }
 0x175   :  { %v2436_v47 = vpop.f32.mrf.mxu0 }
 0x177   :  { %v2438_v48 = vpop.f32.mrf.mxu0 }
 0x179   :  { %v2442_v50 = vpop.f32.mrf.mxu0 }
 0x17b   :  { %v2444_v51 = vpop.f32.mrf.mxu0 }
 0x17d   :  { %v605_v53 = vpop.f32.mrf.mxu0 }
 0x17e   :  { %v652_v54 = vadd.f32 %v605_v53, %v225_v31  ;;  %v2455_v31 = vld [vmem:[%s2761_s3] ss:$0 sm:$0xff] }
 0x17f   :  { %v607_v55 = vpop.f32.mrf.mxu0 }
 0x180   :  { %v1593_v56 = vmul.f32 -1.442695, %v652_v54  ;;  %v659_v3 = vadd.f32 %v607_v55, %v227_v32 }
 0x181   :  { %v609_v59 = vpop.f32.mrf.mxu0 }
 0x182   :  { %2000 = vpow2.f32 %v1593_v56  ;;  %v1594_v10 = vmul.f32 -1.442695, %v659_v3 }
 0x183   :  { %v610_v60 = vpop.f32.mrf.mxu0 }
 0x184   :  { %2002 = vpow2.f32 %v1594_v10 }
 0x187   :  { %v646_v63 = vpop.f32.mrf.mxu1 }
 0x188   :  { %v666_v53 = vadd.f32 %v2455_v31, %v646_v63 }
 0x189   :  { %v1785_v5 = vpop.f32.mrf.mxu1 }
 0x18b   :  { %v649_v6 = vpop.f32.mrf.mxu1 }
 0x18d   :  { %v1786_v11 = vpop.f32.mrf.mxu1 }
 0x18f   :  { %v2001_v14 = vpop.eup %2000 }
 0x190   :  { %v656_v17 = vadd.f32 1.0, %v2001_v14 }
 0x191   :  { %v2003_v54 = vpop.eup %2002 }
 0x192   :  { %2004 = vrcp.f32 %v656_v17  ;;  %v663_v60 = vadd.f32 1.0, %v2003_v54 }
 0x19f   :  { %v2005_v56 = vpop.eup %2004 }
 0x1a0   :  { %v667_v59 = vmul.f32 %v2005_v56, %v666_v53 }
 0x1a2   :  { %v668_v32 = vadd.f32 %v667_v59, %v338_v40 }
 0x1a4   :  { %2006 = vtanh.f32 %v668_v32 }
 0x1a5   :  { %2008 = vrcp.f32 %v663_v60 }
 0x1b1   :  { %v2007_v55 = vpop.eup %2006 }
 0x1b2   :  { %v670_v3 = vsub.f32 0.0, %v2007_v55  ;;  %v2009_v5 = vpop.eup %2008 }
 0x1b4   :  { %v671_v6 = vmul.f32 %v2009_v5, %v670_v3 }
 0x1b6   :  { %v2458_v10 = vadd.f32 %v2007_v55, %v671_v6 }
 0x1b8   :  { %v676_v11 = vpack.c.bf16 %v2458_v10, %v2458_v10 }
 0x1ba   :  { %710 = vmatmul.mubr.bf16.vlgmr.msra.gmra.mxu0 %v676_v11  ;;  %1804 = vmatmul.mubr.bf16.vlgmr.msra.gmra.mxu1 %v676_v11 }
 0x1bb   :  { %784 = vmatpush1.bf16.msra.mxu0 %v2237_v61  ;;  %1808 = vmatpush3.bf16.msra.mxu1 %v2253_v8 }
 0x1bc   :  { %785 = vmatprep.subr.bf16.mxu0 %v2239_v2  ;;  %1809 = vmatprep.subr.bf16.mxu1 %v2767_v1 }
 0x1bd   :  { %815 = vmatprep.mubr.bf16.mxu0 %v2765_v0  ;;  %1823 = vmatprep.mubr.msk.bf16.mxu1 %vm2161_vm8, %v2767_v1 }
 0x1bf   :  { %786 = vmatpush1.bf16.msra.mxu0 %v2246_v4  ;;  %1810 = vmatpush3.bf16.msra.mxu1 %v2289_v16 }
 0x1c0   :  { %787 = vmatprep.subr.bf16.mxu0 %v2249_v7  ;;  %1811 = vmatprep.subr.bf16.mxu1 %v2767_v1 }
 0x1c3   :  { %788 = vmatpush1.bf16.msra.mxu0 %v2260_v9  ;;  %1812 = vmatpush3.bf16.msra.mxu1 %v2309_v20 }
 0x1c4   :  { %789 = vmatprep.subr.bf16.mxu0 %v2266_v12  ;;  %1813 = vmatprep.subr.bf16.mxu1 %v2767_v1 }
 0x1c7   :  { %790 = vmatpush1.bf16.msra.mxu0 %v2280_v13  ;;  %1814 = vmatpush3.bf16.msra.mxu1 %v2326_v23 }
 0x1c8   :  { %791 = vmatprep.subr.bf16.mxu0 %v2284_v15  ;;  %1815 = vmatprep.subr.bf16.mxu1 %v2767_v1 }
 0x1cb   :  { %792 = vmatpush1.bf16.msra.mxu0 %v2301_v18  ;;  %1816 = vmatpush3.bf16.msra.mxu1 %v2342_v26 }
 0x1cc   :  { %793 = vmatprep.subr.bf16.mxu0 %v2305_v19  ;;  %1817 = vmatprep.subr.bf16.mxu1 %v2767_v1 }
 0x1cf   :  { %794 = vmatpush1.bf16.msra.mxu0 %v2319_v21  ;;  %1818 = vmatpush3.bf16.msra.mxu1 %v2354_v28 }
 0x1d0   :  { %795 = vmatprep.subr.bf16.mxu0 %v2322_v22  ;;  %1819 = vmatprep.subr.bf16.mxu1 %v2767_v1 }
 0x1d3   :  { %796 = vmatpush1.bf16.msra.mxu0 %v2336_v24  ;;  %1820 = vmatpush3.bf16.msra.mxu1 %v2364_v29 }
 0x1d4   :  { %797 = vmatprep.subr.bf16.mxu0 %v2339_v25  ;;  %1821 = vmatprep.subr.bf16.mxu1 %v2767_v1 }
 0x1d7   :  { %798 = vmatpush1.bf16.msra.mxu0 %v2350_v27  ;;  %1822 = vmatpush3.bf16.msra.mxu1 %v2372_v30 }
 0x1d8   :  { %889 = vmatprep.subr.bf16.mxu0 %v2231_v57  ;;  %1827 = vmatprep.subr.bf16.mxu1 %v2767_v1 }
 0x27a   :  { %v711_v40 = vpop.f32.mrf.mxu0  ;;  %v752_v63 = vpop.f32.mrf.mxu1 }
 0x27b   :  { %v758_v14 = vadd.f32 %v711_v40, %v2410_v33  ;;  %v772_v0 = vadd.f32 %v2455_v31, %v752_v63 }
 0x27c   :  { %v713_v17 = vpop.f32.mrf.mxu0  ;;  %v1805_v53 = vpop.f32.mrf.mxu1 }
 0x27d   :  { %v1595_v54 = vmul.f32 -1.442695, %v758_v14  ;;  %v765_v55 = vadd.f32 %v713_v17, %v2412_v34 }
 0x27e   :  { %v715_v56 = vpop.f32.mrf.mxu0  ;;  %v755_v59 = vpop.f32.mrf.mxu1 }
 0x27f   :  { %2010 = vpow2.f32 %v1595_v54  ;;  %v1596_v3 = vmul.f32 -1.442695, %v765_v55 }
 0x280   :  { %v716_v60 = vpop.f32.mrf.mxu0  ;;  %v1806_v32 = vpop.f32.mrf.mxu1 }
 0x281   :  { %2012 = vpow2.f32 %v1596_v3 }
 0x28c   :  { %v2011_v5 = vpop.eup %2010 }
 0x28d   :  { %v762_v6 = vadd.f32 1.0, %v2011_v5 }
 0x28e   :  { %v2013_v11 = vpop.eup %2012 }
 0x28f   :  { %2014 = vrcp.f32 %v762_v6  ;;  %v769_v14 = vadd.f32 1.0, %v2013_v11 }
 0x29c   :  { %v2015_v1 = vpop.eup %2014 }
 0x29d   :  { %v773_v33 = vmul.f32 %v2015_v1, %v772_v0  ;;  %v2769_v0 = vmov 0.0   ;;  %v2770_v1 = vmov 0  }
 0x29f   :  { %v774_v40 = vadd.f32 %v2418_v37, %v773_v33 }
 0x2a1   :  { %2016 = vtanh.f32 %v774_v40 }
 0x2a2   :  { %2018 = vrcp.f32 %v769_v14 }
 0x2ae   :  { %v2017_v53 = vpop.eup %2016 }
 0x2af   :  { %v776_v54 = vsub.f32 %v2458_v10, %v2017_v53  ;;  %v2019_v56 = vpop.eup %2018 }
 0x2b1   :  { %v777_v34 = vmul.f32 %v2019_v56, %v776_v54 }
 0x2b3   :  { %v2502_v17 = vadd.f32 %v2017_v53, %v777_v34 }
 0x2b5   :  { %v782_v59 = vpack.c.bf16 %v2502_v17, %v2502_v17 }
 0x2b7   :  { %816 = vmatmul.mubr.bf16.vlgmr.msra.gmra.mxu0 %v782_v59  ;;  %1824 = vmatmul.mubr.bf16.vlgmr.msra.gmra.mxu1 %v782_v59 }
 0x2b8   :  { %890 = vmatpush1.bf16.msra.mxu0 %v2237_v61  ;;  %1828 = vmatpush3.bf16.msra.mxu1 %v2253_v8 }
 0x2b9   :  { %891 = vmatprep.subr.bf16.mxu0 %v2239_v2  ;;  %1829 = vmatprep.subr.bf16.mxu1 %v2769_v0 }
 0x2ba   :  { %921 = vmatprep.mubr.bf16.mxu0 %v2770_v1  ;;  %1843 = vmatprep.mubr.msk.bf16.mxu1 %vm2161_vm8, %v2769_v0 }
 0x2bc   :  { %892 = vmatpush1.bf16.msra.mxu0 %v2246_v4  ;;  %1830 = vmatpush3.bf16.msra.mxu1 %v2289_v16 }
 0x2bd   :  { %893 = vmatprep.subr.bf16.mxu0 %v2249_v7  ;;  %1831 = vmatprep.subr.bf16.mxu1 %v2769_v0 }
 0x2c0   :  { %894 = vmatpush1.bf16.msra.mxu0 %v2260_v9  ;;  %1832 = vmatpush3.bf16.msra.mxu1 %v2309_v20 }
 0x2c1   :  { %895 = vmatprep.subr.bf16.mxu0 %v2266_v12  ;;  %1833 = vmatprep.subr.bf16.mxu1 %v2769_v0 }
 0x2c4   :  { %896 = vmatpush1.bf16.msra.mxu0 %v2280_v13  ;;  %1834 = vmatpush3.bf16.msra.mxu1 %v2326_v23 }
 0x2c5   :  { %897 = vmatprep.subr.bf16.mxu0 %v2284_v15  ;;  %1835 = vmatprep.subr.bf16.mxu1 %v2769_v0 }
 0x2c8   :  { %898 = vmatpush1.bf16.msra.mxu0 %v2301_v18  ;;  %1836 = vmatpush3.bf16.msra.mxu1 %v2342_v26 }
 0x2c9   :  { %899 = vmatprep.subr.bf16.mxu0 %v2305_v19  ;;  %1837 = vmatprep.subr.bf16.mxu1 %v2769_v0 }
 0x2cc   :  { %900 = vmatpush1.bf16.msra.mxu0 %v2319_v21  ;;  %1838 = vmatpush3.bf16.msra.mxu1 %v2354_v28 }
 0x2cd   :  { %901 = vmatprep.subr.bf16.mxu0 %v2322_v22  ;;  %1839 = vmatprep.subr.bf16.mxu1 %v2769_v0 }
 0x2d0   :  { %902 = vmatpush1.bf16.msra.mxu0 %v2336_v24  ;;  %1840 = vmatpush3.bf16.msra.mxu1 %v2364_v29 }
 0x2d1   :  { %903 = vmatprep.subr.bf16.mxu0 %v2339_v25  ;;  %1841 = vmatprep.subr.bf16.mxu1 %v2769_v0 }
 0x2d4   :  { %904 = vmatpush1.bf16.msra.mxu0 %v2350_v27  ;;  %1842 = vmatpush3.bf16.msra.mxu1 %v2372_v30 }
 0x2d5   :  { %995 = vmatprep.subr.bf16.mxu0 %v2231_v57  ;;  %1847 = vmatprep.subr.bf16.mxu1 %v2769_v0 }
 0x377   :  { %v817_v37 = vpop.f32.mrf.mxu0  ;;  %v858_v10 = vpop.f32.mrf.mxu1 }
 0x378   :  { %v864_v63 = vadd.f32 %v817_v37, %v2414_v35  ;;  %v878_v56 = vadd.f32 %v2455_v31, %v858_v10 }
 0x379   :  { %v819_v60 = vpop.f32.mrf.mxu0  ;;  %v1825_v32 = vpop.f32.mrf.mxu1 }
 0x37a   :  { %v1597_v55 = vmul.f32 -1.442695, %v864_v63  ;;  %v871_v33 = vadd.f32 %v819_v60, %v2416_v36 }
 0x37b   :  { %v821_v3 = vpop.f32.mrf.mxu0  ;;  %v861_v5 = vpop.f32.mrf.mxu1 }
 0x37c   :  { %2020 = vpow2.f32 %v1597_v55  ;;  %v1598_v40 = vmul.f32 -1.442695, %v871_v33 }
 0x37d   :  { %v822_v6 = vpop.f32.mrf.mxu0  ;;  %v1826_v11 = vpop.f32.mrf.mxu1 }
 0x37e   :  { %2022 = vpow2.f32 %v1598_v40 }
 0x389   :  { %v2021_v14 = vpop.eup %2020 }
 0x38a   :  { %v868_v53 = vadd.f32 1.0, %v2021_v14 }
 0x38b   :  { %v2023_v54 = vpop.eup %2022 }
 0x38c   :  { %2024 = vrcp.f32 %v868_v53  ;;  %v875_v37 = vadd.f32 1.0, %v2023_v54 }
 0x399   :  { %v2025_v34 = vpop.eup %2024 }
 0x39a   :  { %v879_v35 = vmul.f32 %v2025_v34, %v878_v56 }
 0x39c   :  { %v880_v59 = vadd.f32 %v879_v35, %v2434_v46 }
 0x39e   :  { %2026 = vtanh.f32 %v880_v59 }
 0x39f   :  { %2028 = vrcp.f32 %v875_v37 }
 0x3ab   :  { %v2027_v63 = vpop.eup %2026 }
 0x3ac   :  { %v882_v32 = vsub.f32 %v2502_v17, %v2027_v63  ;;  %v2029_v55 = vpop.eup %2028 }
 0x3ae   :  { %v883_v36 = vmul.f32 %v2029_v55, %v882_v32 }
 0x3b0   :  { %v2546_v60 = vadd.f32 %v2027_v63, %v883_v36 }
 0x3b2   :  { %v888_v3 = vpack.c.bf16 %v2546_v60, %v2546_v60 }
 0x3b4   :  { %922 = vmatmul.mubr.bf16.vlgmr.msra.gmra.mxu0 %v888_v3  ;;  %1844 = vmatmul.mubr.bf16.vlgmr.msra.gmra.mxu1 %v888_v3 }
 0x3b5   :  { %996 = vmatpush1.bf16.msra.mxu0 %v2237_v61  ;;  %1848 = vmatpush3.bf16.msra.mxu1 %v2253_v8 }
 0x3b6   :  { %997 = vmatprep.subr.bf16.mxu0 %v2239_v2  ;;  %1849 = vmatprep.subr.bf16.mxu1 %v2769_v0 }
 0x3b7   :  { %1027 = vmatprep.mubr.bf16.mxu0 %v2770_v1  ;;  %1863 = vmatprep.mubr.msk.bf16.mxu1 %vm2161_vm8, %v2769_v0 }
 0x3b9   :  { %998 = vmatpush1.bf16.msra.mxu0 %v2246_v4  ;;  %1850 = vmatpush3.bf16.msra.mxu1 %v2289_v16 }
 0x3ba   :  { %999 = vmatprep.subr.bf16.mxu0 %v2249_v7  ;;  %1851 = vmatprep.subr.bf16.mxu1 %v2769_v0 }
 0x3bd   :  { %1000 = vmatpush1.bf16.msra.mxu0 %v2260_v9  ;;  %1852 = vmatpush3.bf16.msra.mxu1 %v2309_v20 }
 0x3be   :  { %1001 = vmatprep.subr.bf16.mxu0 %v2266_v12  ;;  %1853 = vmatprep.subr.bf16.mxu1 %v2769_v0 }
 0x3c1   :  { %1002 = vmatpush1.bf16.msra.mxu0 %v2280_v13  ;;  %1854 = vmatpush3.bf16.msra.mxu1 %v2326_v23 }
 0x3c2   :  { %1003 = vmatprep.subr.bf16.mxu0 %v2284_v15  ;;  %1855 = vmatprep.subr.bf16.mxu1 %v2769_v0 }
 0x3c5   :  { %1004 = vmatpush1.bf16.msra.mxu0 %v2301_v18  ;;  %1856 = vmatpush3.bf16.msra.mxu1 %v2342_v26 }
 0x3c6   :  { %1005 = vmatprep.subr.bf16.mxu0 %v2305_v19  ;;  %1857 = vmatprep.subr.bf16.mxu1 %v2769_v0 }
 0x3c9   :  { %1006 = vmatpush1.bf16.msra.mxu0 %v2319_v21  ;;  %1858 = vmatpush3.bf16.msra.mxu1 %v2354_v28 }
 0x3ca   :  { %1007 = vmatprep.subr.bf16.mxu0 %v2322_v22  ;;  %1859 = vmatprep.subr.bf16.mxu1 %v2769_v0 }
 0x3cd   :  { %1008 = vmatpush1.bf16.msra.mxu0 %v2336_v24  ;;  %1860 = vmatpush3.bf16.msra.mxu1 %v2364_v29 }
 0x3ce   :  { %1009 = vmatprep.subr.bf16.mxu0 %v2339_v25  ;;  %1861 = vmatprep.subr.bf16.mxu1 %v2769_v0 }
 0x3d1   :  { %1010 = vmatpush1.bf16.msra.mxu0 %v2350_v27  ;;  %1862 = vmatpush3.bf16.msra.mxu1 %v2372_v30 }
 0x3d2   :  { %1101 = vmatprep.subr.bf16.mxu0 %v2231_v57  ;;  %1867 = vmatprep.subr.bf16.mxu1 %v2769_v0 }
 0x474   :  { %v923_v46 = vpop.f32.mrf.mxu0  ;;  %v964_v17 = vpop.f32.mrf.mxu1 }
 0x475   :  { %v970_v10 = vadd.f32 %v923_v46, %v2420_v38  ;;  %v984_v37 = vadd.f32 %v2455_v31, %v964_v17 }
 0x476   :  { %v925_v5 = vpop.f32.mrf.mxu0  ;;  %v1845_v6 = vpop.f32.mrf.mxu1 }
 0x477   :  { %v1599_v11 = vmul.f32 -1.442695, %v970_v10  ;;  %v977_v54 = vadd.f32 %v925_v5, %v2422_v39 }
 0x478   :  { %v927_v33 = vpop.f32.mrf.mxu0  ;;  %v967_v40 = vpop.f32.mrf.mxu1 }
 0x479   :  { %2030 = vpow2.f32 %v1599_v11  ;;  %v1600_v56 = vmul.f32 -1.442695, %v977_v54 }
 0x47a   :  { %v928_v14 = vpop.f32.mrf.mxu0  ;;  %v1846_v53 = vpop.f32.mrf.mxu1 }
 0x47b   :  { %2032 = vpow2.f32 %v1600_v56 }
 0x486   :  { %v2031_v34 = vpop.eup %2030 }
 0x487   :  { %v974_v35 = vadd.f32 1.0, %v2031_v34 }
 0x488   :  { %v2033_v59 = vpop.eup %2032 }
 0x489   :  { %2034 = vrcp.f32 %v974_v35  ;;  %v981_v55 = vadd.f32 1.0, %v2033_v59 }
 0x496   :  { %v2035_v63 = vpop.eup %2034 }
 0x497   :  { %v985_v38 = vmul.f32 %v2035_v63, %v984_v37 }
 0x499   :  { %v986_v32 = vadd.f32 %v2428_v43, %v985_v38 }
 0x49b   :  { %2036 = vtanh.f32 %v986_v32 }
 0x49c   :  { %2038 = vrcp.f32 %v981_v55 }
 0x4a8   :  { %v2037_v36 = vpop.eup %2036 }
 0x4a9   :  { %v988_v3 = vsub.f32 %v2546_v60, %v2037_v36  ;;  %v2039_v46 = vpop.eup %2038 }
 0x4ab   :  { %v989_v39 = vmul.f32 %v2039_v46, %v988_v3 }
 0x4ad   :  { %v2590_v10 = vadd.f32 %v2037_v36, %v989_v39 }
 0x4af   :  { %v994_v5 = vpack.c.bf16 %v2590_v10, %v2590_v10 }
 0x4b1   :  { %1028 = vmatmul.mubr.bf16.vlgmr.msra.gmra.mxu0 %v994_v5  ;;  %1864 = vmatmul.mubr.bf16.vlgmr.msra.gmra.mxu1 %v994_v5 }
 0x4b2   :  { %1102 = vmatpush1.bf16.msra.mxu0 %v2237_v61  ;;  %1868 = vmatpush3.bf16.msra.mxu1 %v2253_v8 }
 0x4b3   :  { %1103 = vmatprep.subr.bf16.mxu0 %v2239_v2  ;;  %1869 = vmatprep.subr.bf16.mxu1 %v2769_v0 }
 0x4b4   :  { %1133 = vmatprep.mubr.bf16.mxu0 %v2770_v1  ;;  %1883 = vmatprep.mubr.msk.bf16.mxu1 %vm2161_vm8, %v2769_v0 }
 0x4b6   :  { %1104 = vmatpush1.bf16.msra.mxu0 %v2246_v4  ;;  %1870 = vmatpush3.bf16.msra.mxu1 %v2289_v16 }
 0x4b7   :  { %1105 = vmatprep.subr.bf16.mxu0 %v2249_v7  ;;  %1871 = vmatprep.subr.bf16.mxu1 %v2769_v0 }
 0x4ba   :  { %1106 = vmatpush1.bf16.msra.mxu0 %v2260_v9  ;;  %1872 = vmatpush3.bf16.msra.mxu1 %v2309_v20 }
 0x4bb   :  { %1107 = vmatprep.subr.bf16.mxu0 %v2266_v12  ;;  %1873 = vmatprep.subr.bf16.mxu1 %v2769_v0 }
 0x4be   :  { %1108 = vmatpush1.bf16.msra.mxu0 %v2280_v13  ;;  %1874 = vmatpush3.bf16.msra.mxu1 %v2326_v23 }
 0x4bf   :  { %1109 = vmatprep.subr.bf16.mxu0 %v2284_v15  ;;  %1875 = vmatprep.subr.bf16.mxu1 %v2769_v0 }
 0x4c2   :  { %1110 = vmatpush1.bf16.msra.mxu0 %v2301_v18  ;;  %1876 = vmatpush3.bf16.msra.mxu1 %v2342_v26 }
 0x4c3   :  { %1111 = vmatprep.subr.bf16.mxu0 %v2305_v19  ;;  %1877 = vmatprep.subr.bf16.mxu1 %v2769_v0 }
 0x4c6   :  { %1112 = vmatpush1.bf16.msra.mxu0 %v2319_v21  ;;  %1878 = vmatpush3.bf16.msra.mxu1 %v2354_v28 }
 0x4c7   :  { %1113 = vmatprep.subr.bf16.mxu0 %v2322_v22  ;;  %1879 = vmatprep.subr.bf16.mxu1 %v2769_v0 }
 0x4ca   :  { %1114 = vmatpush1.bf16.msra.mxu0 %v2336_v24  ;;  %1880 = vmatpush3.bf16.msra.mxu1 %v2364_v29 }
 0x4cb   :  { %1115 = vmatprep.subr.bf16.mxu0 %v2339_v25  ;;  %1881 = vmatprep.subr.bf16.mxu1 %v2769_v0 }
 0x4ce   :  { %1116 = vmatpush1.bf16.msra.mxu0 %v2350_v27  ;;  %1882 = vmatpush3.bf16.msra.mxu1 %v2372_v30 }
 0x4cf   :  { %1207 = vmatprep.subr.bf16.mxu0 %v2231_v57  ;;  %1887 = vmatprep.subr.bf16.mxu1 %v2769_v0 }
 0x571   :  { %v1029_v43 = vpop.f32.mrf.mxu0  ;;  %v1070_v60 = vpop.f32.mrf.mxu1 }
 0x572   :  { %v1076_v17 = vadd.f32 %v1029_v43, %v2424_v41  ;;  %v1090_v37 = vadd.f32 %v2455_v31, %v1070_v60 }
 0x573   :  { %v1031_v6 = vpop.f32.mrf.mxu0  ;;  %v1865_v11 = vpop.f32.mrf.mxu1 }
 0x574   :  { %v1601_v33 = vmul.f32 -1.442695, %v1076_v17  ;;  %v1083_v56 = vadd.f32 %v1031_v6, %v2426_v42 }
 0x575   :  { %v1033_v40 = vpop.f32.mrf.mxu0  ;;  %v1073_v14 = vpop.f32.mrf.mxu1 }
 0x576   :  { %2040 = vpow2.f32 %v1601_v33  ;;  %v1602_v34 = vmul.f32 -1.442695, %v1083_v56 }
 0x577   :  { %v1034_v53 = vpop.f32.mrf.mxu0  ;;  %v1866_v54 = vpop.f32.mrf.mxu1 }
 0x578   :  { %2042 = vpow2.f32 %v1602_v34 }
 0x583   :  { %v2041_v35 = vpop.eup %2040 }
 0x584   :  { %v1080_v59 = vadd.f32 1.0, %v2041_v35 }
 0x585   :  { %v2043_v57 = vpop.eup %2042 }
 0x586   :  { %2044 = vrcp.f32 %v1080_v59  ;;  %v1087_v32 = vadd.f32 1.0, %v2043_v57 }
 0x593   :  { %v2045_v63 = vpop.eup %2044 }
 0x594   :  { %v1091_v41 = vmul.f32 %v2045_v63, %v1090_v37 }
 0x596   :  { %v1092_v38 = vadd.f32 %v1091_v41, %v2446_v52  ;;  %v2081_v41 = vld [vmem:[#allocation6 + $0xa8] ss:$12 sps:$4 sm:$0xff]  }
 0x598   :  { %2046 = vtanh.f32 %v1092_v38  ;;  %v2083_v38 = vld [vmem:[#allocation6 + $0x90] ss:$12 sps:$4 sm:$0xff]  }
 0x599   :  { %2048 = vrcp.f32 %v1087_v32  ;;  %v2084_v32 = vld [vmem:[#allocation6 + $0x7c] ss:$12 sps:$4 sm:$0xff]  }
 0x5a5   :  { %v2047_v55 = vpop.eup %2046 }
 0x5a6   :  { %v1094_v36 = vsub.f32 %v2590_v10, %v2047_v55  ;;  %v2049_v3 = vpop.eup %2048 }
 0x5a8   :  { %v1095_v42 = vmul.f32 %v2049_v3, %v1094_v36 }
 0x5aa   :  { %v2634_v46 = vadd.f32 %v2047_v55, %v1095_v42  ;;  %v2085_v55 = vld [vmem:[#allocation6 + $0x78] ss:$12 sps:$4 sm:$0xff]  }
 0x5ac   :  { %v1100_v39 = vpack.c.bf16 %v2634_v46, %v2634_v46 }
 0x5ae   :  { %1134 = vmatmul.mubr.bf16.vlgmr.msra.gmra.mxu0 %v1100_v39  ;;  %1884 = vmatmul.mubr.bf16.vlgmr.msra.gmra.mxu1 %v1100_v39 }
 0x5af   :  { %1208 = vmatpush1.bf16.msra.mxu0 %v2237_v61  ;;  %1888 = vmatpush3.bf16.msra.mxu1 %v2253_v8  ;;  %v2080_v61 = vld [vmem:[#allocation6 + $0xac] ss:$12 sps:$4 sm:$0xff]  }
 0x5b0   :  { %1209 = vmatprep.subr.bf16.mxu0 %v2239_v2  ;;  %1889 = vmatprep.subr.bf16.mxu1 %v2769_v0 }
 0x5b1   :  { %1239 = vmatprep.mubr.bf16.mxu0 %v2770_v1  ;;  %1903 = vmatprep.mubr.msk.bf16.mxu1 %vm2161_vm8, %v2769_v0 }
 0x5b3   :  { %1210 = vmatpush1.bf16.msra.mxu0 %v2246_v4  ;;  %1890 = vmatpush3.bf16.msra.mxu1 %v2289_v16 }
 0x5b4   :  { %1211 = vmatprep.subr.bf16.mxu0 %v2249_v7  ;;  %1891 = vmatprep.subr.bf16.mxu1 %v2769_v0 }
 0x5b7   :  { %1212 = vmatpush1.bf16.msra.mxu0 %v2260_v9  ;;  %1892 = vmatpush3.bf16.msra.mxu1 %v2309_v20 }
 0x5b8   :  { %1213 = vmatprep.subr.bf16.mxu0 %v2266_v12  ;;  %1893 = vmatprep.subr.bf16.mxu1 %v2769_v0 }
 0x5bb   :  { %1214 = vmatpush1.bf16.msra.mxu0 %v2280_v13  ;;  %1894 = vmatpush3.bf16.msra.mxu1 %v2326_v23 }
 0x5bc   :  { %1215 = vmatprep.subr.bf16.mxu0 %v2284_v15  ;;  %1895 = vmatprep.subr.bf16.mxu1 %v2769_v0 }
 0x5bf   :  { %1216 = vmatpush1.bf16.msra.mxu0 %v2301_v18  ;;  %1896 = vmatpush3.bf16.msra.mxu1 %v2342_v26 }
 0x5c0   :  { %1217 = vmatprep.subr.bf16.mxu0 %v2305_v19  ;;  %1897 = vmatprep.subr.bf16.mxu1 %v2769_v0 }
 0x5c3   :  { %1218 = vmatpush1.bf16.msra.mxu0 %v2319_v21  ;;  %1898 = vmatpush3.bf16.msra.mxu1 %v2354_v28 }
 0x5c4   :  { %1219 = vmatprep.subr.bf16.mxu0 %v2322_v22  ;;  %1899 = vmatprep.subr.bf16.mxu1 %v2769_v0 }
 0x5c7   :  { %1220 = vmatpush1.bf16.msra.mxu0 %v2336_v24  ;;  %1900 = vmatpush3.bf16.msra.mxu1 %v2364_v29 }
 0x5c8   :  { %1221 = vmatprep.subr.bf16.mxu0 %v2339_v25  ;;  %1901 = vmatprep.subr.bf16.mxu1 %v2769_v0 }
 0x5cb   :  { %1222 = vmatpush1.bf16.msra.mxu0 %v2350_v27  ;;  %1902 = vmatpush3.bf16.msra.mxu1 %v2372_v30 }
 0x5cc   :  { %1313 = vmatprep.subr.bf16.mxu0 %v2080_v61  ;;  %1907 = vmatprep.subr.bf16.mxu1 %v2769_v0  ;;  %v1992_v61 = vld [vmem:[%s2762_s4 + $0x38] sm:$0xff]  }
 0x66e   :  { %v1135_v2 = vpop.f32.mrf.mxu0  ;;  %v1176_v4 = vpop.f32.mrf.mxu1 }
 0x66f   :  { %v1182_v7 = vadd.f32 %v1135_v2, %v2430_v44  ;;  %v1196_v53 = vadd.f32 %v2455_v31, %v1176_v4  ;;  %v1994_v2 = vld [vmem:[%s2762_s4 + $0x28] sm:$0xff]   ;;  %v1995_v4 = vld [vmem:[%s2762_s4 + $0x20] sm:$0xff]  }
 0x670   :  { %v1137_v9 = vpop.f32.mrf.mxu0  ;;  %v1885_v52 = vpop.f32.mrf.mxu1 }
 0x671   :  { %v1603_v10 = vmul.f32 -1.442695, %v1182_v7  ;;  %v1189_v6 = vadd.f32 %v1137_v9, %v2432_v45  ;;  %v1996_v7 = vld [vmem:[%s2762_s4 + $0x18] sm:$0xff]   ;;  %v1997_v9 = vld [vmem:[%s2762_s4 + $0x10] sm:$0xff]   ;;  %v1998_v52 = vld [vmem:[%s2762_s4 + $0x8] sm:$0xff]  }
 0x672   :  { %v1139_v5 = vpop.f32.mrf.mxu0  ;;  %v1179_v43 = vpop.f32.mrf.mxu1 }
 0x673   :  { %2050 = vpow2.f32 %v1603_v10  ;;  %v1604_v11 = vmul.f32 -1.442695, %v1189_v6  ;;  %v1999_v10 = vld [vmem:[%s2762_s4] sm:$0xff]  }
 0x674   :  { %v1140_v60 = vpop.f32.mrf.mxu0  ;;  %v1886_v17 = vpop.f32.mrf.mxu1 }
 0x675   :  { %2052 = vpow2.f32 %v1604_v11 }
 0x680   :  { %v2051_v33 = vpop.eup %2050 }
 0x681   :  { %v1186_v40 = vadd.f32 1.0, %v2051_v33 }
 0x682   :  { %v2053_v14 = vpop.eup %2052 }
 0x683   :  { %2054 = vrcp.f32 %v1186_v40  ;;  %v1193_v34 = vadd.f32 1.0, %v2053_v14 }
 0x690   :  { %v2055_v54 = vpop.eup %2054 }
 0x691   :  { %v1197_v44 = vmul.f32 %v2055_v54, %v1196_v53 }
 0x693   :  { %v1198_v56 = vadd.f32 %v2440_v49, %v1197_v44  ;;  %v2082_v49 = vld [vmem:[#allocation6 + $0x94] ss:$12 sps:$4 sm:$0xff]  }
 0x695   :  { %2056 = vtanh.f32 %v1198_v56 }
 0x696   :  { %2058 = vrcp.f32 %v1193_v34 }
 0x6a2   :  { %v2057_v35 = vpop.eup %2056 }
 0x6a3   :  { %v1200_v59 = vsub.f32 %v2634_v46, %v2057_v35  ;;  %v2059_v57 = vpop.eup %2058 }
 0x6a5   :  { %v1201_v45 = vmul.f32 %v2059_v57, %v1200_v59 }
 0x6a7   :  { %v2677_v37 = vadd.f32 %v2057_v35, %v1201_v45 }
 0x6a9   :  { %v1206_v63 = vpack.c.bf16 %v2677_v37, %v2677_v37 }
 0x6ab   :  { %1240 = vmatmul.mubr.bf16.vlgmr.msra.gmra.mxu0 %v1206_v63  ;;  %1904 = vmatmul.mubr.bf16.vlgmr.msra.gmra.mxu1 %v1206_v63 }
 0x6ac   :  { %1314 = vmatpush1.bf16.msra.mxu0 %v2081_v41  ;;  %1908 = vmatpush3.bf16.msra.mxu1 %v2253_v8 }
 0x6ad   :  { %1315 = vmatprep.subr.bf16.mxu0 %v2082_v49  ;;  %1909 = vmatprep.subr.bf16.mxu1 %v2769_v0 }
 0x6ae   :  { %1345 = vmatprep.mubr.bf16.mxu0 %v2770_v1  ;;  %1923 = vmatprep.mubr.msk.bf16.mxu1 %vm2161_vm8, %v2769_v0 }
 0x6b0   :  { %1316 = vmatpush1.bf16.msra.mxu0 %v2083_v38  ;;  %1910 = vmatpush3.bf16.msra.mxu1 %v2289_v16 }
 0x6b1   :  { %1317 = vmatprep.subr.bf16.mxu0 %v2084_v32  ;;  %1911 = vmatprep.subr.bf16.mxu1 %v2769_v0  ;;  %v1609_v32 = vld [vmem:[%s2763_s5] ss:$0 sm:$0xff] }
 0x6b4   :  { %1318 = vmatpush1.bf16.msra.mxu0 %v2085_v55  ;;  %1912 = vmatpush3.bf16.msra.mxu1 %v2309_v20 }
 0x6b5   :  { %1319 = vmatprep.subr.bf16.mxu0 %v2266_v12  ;;  %1913 = vmatprep.subr.bf16.mxu1 %v2769_v0 }
 0x6b8   :  { %1320 = vmatpush1.bf16.msra.mxu0 %v2280_v13  ;;  %1914 = vmatpush3.bf16.msra.mxu1 %v2326_v23 }
 0x6b9   :  { %1321 = vmatprep.subr.bf16.mxu0 %v2284_v15  ;;  %1915 = vmatprep.subr.bf16.mxu1 %v2769_v0 }
 0x6bc   :  { %1322 = vmatpush1.bf16.msra.mxu0 %v2301_v18  ;;  %1916 = vmatpush3.bf16.msra.mxu1 %v2342_v26 }
 0x6bd   :  { %1323 = vmatprep.subr.bf16.mxu0 %v2305_v19  ;;  %1917 = vmatprep.subr.bf16.mxu1 %v2769_v0 }
 0x6c0   :  { %1324 = vmatpush1.bf16.msra.mxu0 %v2319_v21  ;;  %1918 = vmatpush3.bf16.msra.mxu1 %v2354_v28 }
 0x6c1   :  { %1325 = vmatprep.subr.bf16.mxu0 %v2322_v22  ;;  %1919 = vmatprep.subr.bf16.mxu1 %v2769_v0 }
 0x6c4   :  { %1326 = vmatpush1.bf16.msra.mxu0 %v2336_v24  ;;  %1920 = vmatpush3.bf16.msra.mxu1 %v2364_v29 }
 0x6c5   :  { %1327 = vmatprep.subr.bf16.mxu0 %v2339_v25  ;;  %1921 = vmatprep.subr.bf16.mxu1 %v2769_v0 }
 0x6c8   :  { %1328 = vmatpush1.bf16.msra.mxu0 %v2350_v27  ;;  %1922 = vmatpush3.bf16.msra.mxu1 %v2372_v30 }
 0x6c9   :  { %1927 = vmatprep.subr.bf16.mxu0 %v2769_v0 }
 0x76b   :  { %v1241_v8 = vpop.f32.mrf.mxu0  ;;  %v1282_v12 = vpop.f32.mrf.mxu1 }
 0x76c   :  { %v1288_v13 = vadd.f32 %v1241_v8, %v2436_v47  ;;  %v1302_v28 = vadd.f32 %v2455_v31, %v1282_v12 }
 0x76d   :  { %v1243_v15 = vpop.f32.mrf.mxu0  ;;  %v1905_v16 = vpop.f32.mrf.mxu1 }
 0x76e   :  { %v1605_v18 = vmul.f32 -1.442695, %v1288_v13  ;;  %v1295_v23 = vadd.f32 %v1243_v15, %v2438_v48 }
 0x76f   :  { %v1245_v19 = vpop.f32.mrf.mxu0  ;;  %v1285_v20 = vpop.f32.mrf.mxu1 }
 0x770   :  { %2060 = vpow2.f32 %v1605_v18  ;;  %v1606_v24 = vmul.f32 -1.442695, %v1295_v23 }
 0x771   :  { %v1246_v21 = vpop.f32.mrf.mxu0  ;;  %v1906_v22 = vpop.f32.mrf.mxu1 }
 0x772   :  { %2062 = vpow2.f32 %v1606_v24 }
 0x77d   :  { %v2061_v25 = vpop.eup %2060 }
 0x77e   :  { %v1292_v26 = vadd.f32 1.0, %v2061_v25 }
 0x77f   :  { %v2063_v27 = vpop.eup %2062 }
 0x780   :  { %2064 = vrcp.f32 %v1292_v26  ;;  %v1299_v1 = vadd.f32 1.0, %v2063_v27 }
 0x78d   :  { %v2065_v29 = vpop.eup %2064 }
 0x78e   :  { %v1303_v30 = vmul.f32 %v2065_v29, %v1302_v28 }
 0x790   :  { %v1304_v47 = vadd.f32 %v1303_v30, %v2450_v62  ;;  %v1993_v62 = vld [vmem:[%s2762_s4 + $0x30] sm:$0xff]  }
 0x792   :  { %2066 = vtanh.f32 %v1304_v47 }
 0x793   :  { %2068 = vrcp.f32 %v1299_v1 }
 0x79f   :  { %v2067_v36 = vpop.eup %2066 }
 0x7a0   :  { %v1306_v3 = vsub.f32 %v2677_v37, %v2067_v36  ;;  %v2069_v42 = vpop.eup %2068 }
 0x7a2   :  { %v1307_v48 = vmul.f32 %v2069_v42, %v1306_v3 }
 0x7a4   :  { %v1308_v46 = vadd.f32 %v2067_v36, %v1307_v48 }
 0x7a6   :  { %v1312_v39 = vpack.c.bf16 %v1308_v46, %v1308_v46 }
 0x7a8   :  { %1346 = vmatmul.mubr.bf16.vlgmr.msra.gmra.mxu0 %v1312_v39  ;;  %1924 = vmatmul.mubr.bf16.vlgmr.msra.gmra.mxu1 %v1312_v39 }
 0x7a9   :  { %1943 = vmatprep.mubr.msk.bf16.mxu0 %vm2161_vm8, %v2769_v0  ;;  %1928 = vmatpush3.bf16.msra.mxu0 %v1992_v61 }
 0x7aa   :  { %1929 = vmatprep.subr.bf16.mxu0 %v2769_v0 }
 0x7ad   :  { %1930 = vmatpush3.bf16.msra.mxu0 %v1993_v62 }
 0x7ae   :  { %1931 = vmatprep.subr.bf16.mxu0 %v2769_v0 }
 0x7b1   :  { %1932 = vmatpush3.bf16.msra.mxu0 %v1994_v2 }
 0x7b2   :  { %1933 = vmatprep.subr.bf16.mxu0 %v2769_v0 }
 0x7b5   :  { %1934 = vmatpush3.bf16.msra.mxu0 %v1995_v4 }
 0x7b6   :  { %1935 = vmatprep.subr.bf16.mxu0 %v2769_v0 }
 0x7b9   :  { %1936 = vmatpush3.bf16.msra.mxu0 %v1996_v7 }
 0x7ba   :  { %1937 = vmatprep.subr.bf16.mxu0 %v2769_v0 }
 0x7bd   :  { %1938 = vmatpush3.bf16.msra.mxu0 %v1997_v9 }
 0x7be   :  { %1939 = vmatprep.subr.bf16.mxu0 %v2769_v0 }
 0x7c1   :  { %1940 = vmatpush3.bf16.msra.mxu0 %v1998_v52 }
 0x7c2   :  { %1941 = vmatprep.subr.bf16.mxu0 %v2769_v0 }
 0x7c5   :  { %1942 = vmatpush3.bf16.msra.mxu0 %v1999_v10 }
 0x868   :  { %v1347_v5 = vpop.f32.mrf.mxu0  ;;  %v1388_v43 = vpop.f32.mrf.mxu1 }
 0x869   :  { %v1394_v60 = vadd.f32 %v1347_v5, %v2442_v50  ;;  %v1408_v35 = vadd.f32 %v2455_v31, %v1388_v43 }
 0x86a   :  { %v1349_v17 = vpop.f32.mrf.mxu0  ;;  %v1925_v6 = vpop.f32.mrf.mxu1 }
 0x86b   :  { %v1607_v11 = vmul.f32 -1.442695, %v1394_v60  ;;  %v1401_v54 = vadd.f32 %v1349_v17, %v2444_v51 }
 0x86c   :  { %v1351_v33 = vpop.f32.mrf.mxu0  ;;  %v1391_v40 = vpop.f32.mrf.mxu1 }
 0x86d   :  { %2070 = vpow2.f32 %v1607_v11  ;;  %v1608_v44 = vmul.f32 -1.442695, %v1401_v54 }
 0x86e   :  { %v1352_v14 = vpop.f32.mrf.mxu0  ;;  %v1926_v53 = vpop.f32.mrf.mxu1 }
 0x86f   :  { %2072 = vpow2.f32 %v1608_v44 }
 0x87a   :  { %v2071_v56 = vpop.eup %2070 }
 0x87b   :  { %v1398_v34 = vadd.f32 1.0, %v2071_v56 }
 0x87c   :  { %v2073_v0 = vpop.eup %2072 }
 0x87d   :  { %2074 = vrcp.f32 %v1398_v34  ;;  %v1405_v45 = vadd.f32 1.0, %v2073_v0 }
 0x88a   :  { %v2075_v59 = vpop.eup %2074 }
 0x88b   :  { %v1409_v50 = vmul.f32 %v2075_v59, %v1408_v35 }
 0x88d   :  { %v1410_v57 = vadd.f32 %v2448_v58, %v1409_v50 }
 0x88f   :  { %2076 = vtanh.f32 %v1410_v57 }
 0x890   :  { %2078 = vrcp.f32 %v1405_v45 }
 0x89c   :  { %v2077_v37 = vpop.eup %2076 }
 0x89d   :  { %v1412_v63 = vsub.f32 %v1308_v46, %v2077_v37  ;;  %v2079_v41 = vpop.eup %2078 }
 0x89f   :  { %v1413_v49 = vmul.f32 %v2079_v41, %v1412_v63 }
 0x8a1   :  { %v1414_v51 = vadd.f32 %v2077_v37, %v1413_v49 }
 0x8a3   :  { %v1415_v38 = vpack.c.bf16 %v1414_v51, %v1414_v51 }
 0x8a5   :  { %1944 = vmatmul.mubr.bf16.vlgmr.msra.gmra.mxu0 %v1415_v38 }
 0x965   :  { %v1521_v31 = vpop.f32.mrf.mxu0 }
 0x966   :  { %v1522_v55 = vadd.f32 %v1609_v32, %v1521_v31 }
 0x967   :  { %v1945_v58 = vpop.f32.mrf.mxu0 }
 0x968   :  { %1527 = vst [vmem:[#allocation8] sm:$0xff] %v1522_v55 }
 0x969   :  { %v1524_v8 = vpop.f32.mrf.mxu0 }
 0x96a   :  { %2137 = shalt.err (!%p2134_p0)
}
 0x96b   :  { %1537 = dma.vmem_to_hbm [thread:$0]  %s1535_s17, 128, %s2764_s6, [#allocation5]   ;;  %v1946_v12 = vpop.f32.mrf.mxu0 }
 0x96c   :  { %2150 = dma.done.wait [#allocation5], 128  }
 0x96d   :  { %2151 = vsyncadd [#allocation5], 4294967168 }
 0x96e   :  { %1541 = vsyncpa [#allocation4], 1 }
 0x96f   :  { %1542 = vsyncpa [#allocation7], 1 }
 0x970   :  { %1543 = vsyncpa [#allocation5], 1 }

</bundles_post_ra>
